<compile_context>
chip_gen: v7x
topology: tpu7x:2x2x1
jax: 0.10.0
libtpu: 0.0.40
codegen_flags: <defaults>
</compile_context>

<pallas_src>
import jax
import jax.numpy as jnp
from jax.experimental import pallas as pl
from jax.experimental.pallas import tpu as pltpu


# ---------------------------------------------------------------------------
# Kernel
# ---------------------------------------------------------------------------
def _qlinear_kernel(xr_ref, xi_ref, xj_ref, xk_ref,
                    wr_ref, wi_ref, wj_ref, wk_ref, b_ref,
                    o_ref, acc_ref, xbig_ref):
    """One (i, j, k) grid step of the block-tiled quaternion linear.

    x*_ref : (tm, tk)      activation tile of one quaternion component
    w*_ref : (tk, tn)      K x N tile of one quaternion weight component
    b_ref  : (4, 1, tn)    bias, one row per output component
    o_ref  : (tm, 4, tn)   component-interleaved output tile
    acc_ref: (4, tm, tn)   f32 accumulator, persists across the K grid axis
    xbig_ref: (4*tms, tk)  staging tile for the weight-stationary big dot
                           (tms = tm rounded up to a multiple of 8)
    """
    k_step = pl.program_id(2)
    tm = xr_ref.shape[0]
    tms = xbig_ref.shape[0] // 4            # 8-aligned row stride inside X_big

    # Only the tiny-shape path (tm not a multiple of 8) has padding rows;
    # zero them so the unused MXU output rows are well defined.
    if tm != tms:
        xbig_ref[...] = jnp.zeros_like(xbig_ref)

    # Stage the four activation components into a single (4*tms, tk) LHS tile,
    # casting to the MXU compute dtype (== weight dtype) on the fly.  The
    # stores go on the vst slot and hide under the MXU.
    cdt = xbig_ref.dtype
    for c, x_ref in enumerate((xr_ref, xi_ref, xj_ref, xk_ref)):
        xbig_ref[c * tms:c * tms + tm, :] = x_ref[...].astype(cdt)
    x_big = xbig_ref[...]

    def mm(w_ref):
        # (4*tms, tk) @ (tk, tn): each weight tile is pushed to the MXU once
        # per K step and streams 4x more LHS rows than the 16-small-dot form.
        return jnp.dot(x_big, w_ref[...], preferred_element_type=jnp.float32)

    # Row-block c of (X_big @ w_d) equals x_c @ w_d.  Scatter the row-blocks
    # into the output-component accumulators with the Hamilton-product signs:
    #   acc0 = xr*wr - xi*wi - xj*wj - xk*wk
    #   acc1 = xr*wi + xi*wr - xj*wk + xk*wj
    #   acc2 = xr*wj + xi*wk + xj*wr - xk*wi
    #   acc3 = xr*wk - xi*wj + xj*wi + xk*wr
    TGT = ((0, 1, 2, 3), (1, 0, 3, 2), (2, 3, 0, 1), (3, 2, 1, 0))
    SGN = ((1, 1, 1, 1), (1, -1, 1, -1), (1, -1, -1, 1), (1, 1, -1, -1))

    # d == 0 (w_r) scatters with an identity permutation and all-plus signs,
    # so it doubles as the accumulator initialization on the first K step
    # (no zero-fill + read-modify-write of the f32 accumulator).
    p0 = mm(wr_ref)

    @pl.when(k_step == 0)
    def _init():
        for c in range(4):
            acc_ref[c] = p0[c * tms:c * tms + tm, :]

    @pl.when(k_step != 0)
    def _accumulate_first():
        for c in range(4):
            acc_ref[c] = acc_ref[c] + p0[c * tms:c * tms + tm, :]

    for d, w_ref in ((1, wi_ref), (2, wj_ref), (3, wk_ref)):
        p = mm(w_ref)
        for c in range(4):
            blk = p[c * tms:c * tms + tm, :]
            t = TGT[d][c]
            if SGN[d][c] > 0:
                acc_ref[t] = acc_ref[t] + blk
            else:
                acc_ref[t] = acc_ref[t] - blk

    @pl.when(k_step == pl.num_programs(2) - 1)
    def _finalize():
        for t in range(4):
            o_ref[:, t, :] = (acc_ref[t]
                              + b_ref[t].astype(jnp.float32)).astype(o_ref.dtype)


# ---------------------------------------------------------------------------
# Tile legalization helpers (keep Mosaic's (8, 128) block rules satisfied for
# both realistic and tiny shapes).
# ---------------------------------------------------------------------------
def _legal_tile(requested, full, align):
    t = min(requested, full)
    if t == full or t % align == 0:   # full-dim blocks or aligned tiles are legal
        return t
    t = (t // align) * align
    return t if t >= align else min(align, full)


def _pick_k_tile(requested, in_f):
    # K must be covered exactly (no OOB garbage may enter the accumulator).
    if in_f <= requested:
        return in_f                    # whole K == full dim -> always legal
    for cand in (requested, 512, 256, 128):
        if cand % 128 == 0 and cand <= in_f and in_f % cand == 0:
            return cand
    return in_f                        # fallback: single K block


# ---------------------------------------------------------------------------
# Wrapper
# ---------------------------------------------------------------------------
def quaternion_linear(x, r_w, i_w, j_w, k_w, bias=None, *,
                      tm=256, tn=256, tk=512, compute_dtype=None):
    """y = x @ W_quaternion + bias, Hamilton product done in a Pallas TPU kernel.

    x      : (M, 4*in_f)
    r/i/j/k: (in_f, out_f) quaternion weight components
    bias   : (4*out_f,) or None
    compute_dtype : MXU input dtype; None -> use the weights' dtype.  For the
        fast path, cast the weights to bf16 ONCE at parameter setup and pass
        them here (the kernel casts the activation tile in VMEM for free).
    """
    M, F = x.shape
    in_f, out_f = r_w.shape
    assert F == 4 * in_f, "input feature dim must equal 4 * in_features"
    for w in (i_w, j_w, k_w):
        assert w.shape == (in_f, out_f)

    out_dtype = x.dtype
    mxu_dtype = (jnp.dtype(compute_dtype) if compute_dtype is not None
                 else jnp.dtype(r_w.dtype))
    if jnp.dtype(r_w.dtype) != mxu_dtype:
        # Prefer casting weights once at setup; this per-call cast is a fallback.
        r_w, i_w, j_w, k_w = (w.astype(mxu_dtype) for w in (r_w, i_w, j_w, k_w))

    if bias is None:
        bias = jnp.zeros((4 * out_f,), dtype=out_dtype)
    b4 = bias.reshape(4, 1, out_f)          # component-major, free reshape

    tm = _legal_tile(tm, M, 8)
    tn = _legal_tile(tn, out_f, 128)
    tk = _pick_k_tile(tk, in_f)

    # v7x has two TensorCores: make sure at least one "parallel" grid axis has
    # >= 2 steps so both cores get work (harmless on single-core chips).
    if pl.cdiv(M, tm) == 1 and pl.cdiv(out_f, tn) == 1:
        if out_f % 256 == 0:
            tn = out_f // 2
        elif M % 16 == 0:
            tm = M // 2

    tms = -(-tm // 8) * 8                   # 8-aligned row stride for X_big
    grid = (pl.cdiv(M, tm), pl.cdiv(out_f, tn), in_f // tk)
    grid_m, grid_n, _ = grid

    # ---- Activation input specs: no wrapper transpose of x. -----------------
    if in_f % 128 == 0:
        # Fast path: fetch each quaternion component as a strided (tm, tk)
        # tile straight out of the flat (M, 4*in_f) activation.
        kblocks = in_f // tk                # tk is a multiple of 128 here
        x_inputs = (x, x, x, x)
        x_specs = [pl.BlockSpec((tm, tk),
                                lambda i, j, k, c=c: (i, c * kblocks + k))
                   for c in range(4)]
    else:
        # Tiny / unaligned in_f: tk == in_f, so slice the components once in
        # the wrapper (one activation-sized pass, tiny shapes only).
        xs = x.reshape(M, 4, in_f)
        x_inputs = tuple(xs[:, c, :] for c in range(4))
        x_specs = [pl.BlockSpec((tm, tk), lambda i, j, k: (i, k))
                   for _ in range(4)]

    w_spec = pl.BlockSpec((tk, tn), lambda i, j, k: (k, j))
    b_spec = pl.BlockSpec((4, 1, tn), lambda i, j, k: (0, 0, j))
    out_spec = pl.BlockSpec((tm, 4, tn), lambda i, j, k: (i, 0, j))

    # ---- VMEM budget (double-buffered inputs/outputs + scratch). ------------
    isz = lambda dt: jnp.dtype(dt).itemsize
    x_isz, w_isz, o_isz = isz(x.dtype), isz(mxu_dtype), isz(out_dtype)
    o_sub = max(8, 32 // o_isz)             # "4" dim padded to a sublane tile
    est = (2 * 4 * tm * tk * x_isz          # 4 activation tiles
           + 2 * 4 * tk * tn * w_isz        # 4 weight tiles
           + 2 * tm * o_sub * tn * o_isz    # output tile
           + 4 * tm * tn * 4                # f32 accumulator
           + 4 * tms * tk * w_isz)          # X_big staging tile
    # v5e/v6e have 128 MiB VMEM (grow tiles freely); v7x only 64 MiB per TC,
    # so keep tiles such that this stays comfortably below ~48 MiB there.
    vmem_limit = int(min(96 * 2**20, max(32 * 2**20, 1.5 * est)))

    flops = 2 * M * (4 * in_f) * (4 * out_f)
    bytes_accessed = int(
        4 * M * in_f * x_isz * grid_n        # activations, re-read per N tile
        + 4 * in_f * out_f * w_isz * grid_m  # weights, re-read per M tile
        + 4 * M * out_f * o_isz)             # output, written once
    cost = pl.CostEstimate(flops=flops, transcendentals=0,
                           bytes_accessed=bytes_accessed)

    # TODO(synk): if profiling shows exposed weight DMA at small tk, add
    # pipeline_mode=pl.Buffered(3) on the weight BlockSpecs.
    y3 = pl.pallas_call(
        _qlinear_kernel,
        out_shape=jax.ShapeDtypeStruct((M, 4, out_f), out_dtype),
        grid_spec=pltpu.PrefetchScalarGridSpec(
            num_scalar_prefetch=0,
            grid=grid,
            in_specs=x_specs + [w_spec, w_spec, w_spec, w_spec, b_spec],
            out_specs=out_spec,
            scratch_shapes=[pltpu.VMEM((4, tm, tn), jnp.float32),
                            pltpu.VMEM((4 * tms, tk), mxu_dtype)],
        ),
        compiler_params=pltpu.CompilerParams(
            dimension_semantics=("parallel", "parallel", "arbitrary"),
            vmem_limit_bytes=vmem_limit,
        ),
        cost_estimate=cost,
    )(*x_inputs, r_w, i_w, j_w, k_w, b4)

    # (M, 4, out_f) -> (M, 4*out_f) is a free, contiguous reshape.
    return y3.reshape(M, 4 * out_f)


# ---------------------------------------------------------------------------
# Pure-JAX reference & synthetic init
# ---------------------------------------------------------------------------
def make_quaternion_weight(r_w, i_w, j_w, k_w):
    """Assemble (4*in_f, 4*out_f) exactly as ops.quaternion_linear does."""
    col_r = jnp.concatenate([r_w, -i_w, -j_w, -k_w], axis=0)
    col_i = jnp.concatenate([i_w,  r_w, -k_w,  j_w], axis=0)
    col_j = jnp.concatenate([j_w,  k_w,  r_w, -i_w], axis=0)
    col_k = jnp.concatenate([k_w, -j_w,  i_w,  r_w], axis=0)
    return jnp.concatenate([col_r, col_i, col_j, col_k], axis=1)


def quaternion_linear_reference(x, r_w, i_w, j_w, k_w, bias):
    W = make_quaternion_weight(r_w, i_w, j_w, k_w)
    y = jnp.dot(x, W, precision=jax.lax.Precision.HIGHEST)
    return y + bias if bias is not None else y


def init_quaternion_linear_params(key, in_features, out_features, dtype=jnp.float32):
    """Synthetic glorot-flavoured init (exact ops.quaternion_init is host-side
    numpy and not needed for the forward pass). Shapes match the module."""
    in_f, out_f = in_features // 4, out_features // 4
    kr, ki, kj, kk = jax.random.split(key, 4)
    sigma = 1.0 / jnp.sqrt(2.0 * (in_f + out_f))
    r_w = sigma * jax.random.normal(kr, (in_f, out_f), dtype)
    i_w = sigma * jax.random.normal(ki, (in_f, out_f), dtype)
    j_w = sigma * jax.random.normal(kj, (in_f, out_f), dtype)
    k_w = sigma * jax.random.normal(kk, (in_f, out_f), dtype)
    bias = jnp.zeros((out_features,), dtype)   # module does bias.data.fill_(0)
    return r_w, i_w, j_w, k_w, bias


if __name__ == "__main__":
    key = jax.random.PRNGKey(0)
    kx, kw, kb, kx2, kw2, kb2 = jax.random.split(key, 6)

    # --- Case 1: 128-aligned per-component dims (flat-x fast path). ---------
    batch, in_features, out_features = 16, 1024, 512     # in_f=256, out_f=128
    x = jax.random.normal(kx, (batch, in_features), jnp.float32)
    r_w, i_w, j_w, k_w, _zero_bias = init_quaternion_linear_params(
        kw, in_features, out_features)
    # Exercise the bias path (trainable parameter, merely initialized to 0).
    bias = 0.1 * jax.random.normal(kb, (out_features,), jnp.float32)

    y_ref = quaternion_linear_reference(x, r_w, i_w, j_w, k_w, bias)

    # Run A: defaults (f32 MXU path, single K step, 2-way parallel M axis).
    y_a = jax.block_until_ready(quaternion_linear(x, r_w, i_w, j_w, k_w, bias))
    assert y_a.shape == (batch, out_features)
    assert jnp.allclose(y_a, y_ref, atol=2e-3, rtol=2e-3), \
        float(jnp.max(jnp.abs(y_a - y_ref)))

    # Run B: force the multi-block K path (accumulate + finalize branches).
    y_b = jax.block_until_ready(
        quaternion_linear(x, r_w, i_w, j_w, k_w, bias, tm=8, tn=128, tk=128))
    assert jnp.allclose(y_b, y_ref, atol=2e-3, rtol=2e-3), \
        float(jnp.max(jnp.abs(y_b - y_ref)))

    # Run C: bf16 compute path — weights cast once "at setup"; the kernel
    # casts the activation tile in VMEM, accumulation stays f32.
    w_bf16 = tuple(w.astype(jnp.bfloat16) for w in (r_w, i_w, j_w, k_w))
    y_c = jax.block_until_ready(quaternion_linear(x, *w_bf16, bias))
    assert jnp.allclose(y_c, y_ref, atol=5e-2, rtol=5e-2), \
        float(jnp.max(jnp.abs(y_c - y_ref)))

    # --- Case 2: tiny, non-128-aligned dims (fallback path, padded staging). -
    b2, inf2, outf2 = 4, 128, 96                          # in_f=32, out_f=24
    x2 = jax.random.normal(kx2, (b2, inf2), jnp.float32)
    r2, i2, j2, k2, _ = init_quaternion_linear_params(kw2, inf2, outf2)
    bias2 = 0.1 * jax.random.normal(kb2, (outf2,), jnp.float32)
    y2_ref = quaternion_linear_reference(x2, r2, i2, j2, k2, bias2)
    y2 = jax.block_until_ready(quaternion_linear(x2, r2, i2, j2, k2, bias2))
    assert y2.shape == (b2, outf2)
    assert jnp.allclose(y2, y2_ref, atol=2e-3, rtol=2e-3), \
        float(jnp.max(jnp.abs(y2 - y2_ref)))

    print("KERNEL_OK")
</pallas_src>

<mosaic_0001>
module attributes {stable_mosaic.version = 11 : i64} {
  func.func @_qlinear_kernel(%arg0: i32, %arg1: i32, %arg2: i32, %arg3: memref<8x256xf32, #tpu.memory_space<vmem>>, %arg4: memref<8x256xf32, #tpu.memory_space<vmem>>, %arg5: memref<8x256xf32, #tpu.memory_space<vmem>>, %arg6: memref<8x256xf32, #tpu.memory_space<vmem>>, %arg7: memref<256x128xf32, #tpu.memory_space<vmem>>, %arg8: memref<256x128xf32, #tpu.memory_space<vmem>>, %arg9: memref<256x128xf32, #tpu.memory_space<vmem>>, %arg10: memref<256x128xf32, #tpu.memory_space<vmem>>, %arg11: memref<4x1x128xf32, #tpu.memory_space<vmem>>, %arg12: memref<8x4x128xf32, #tpu.memory_space<vmem>>, %arg13: memref<4x8x128xf32, #tpu.memory_space<vmem>>, %arg14: memref<32x256xf32, #tpu.memory_space<vmem>>) attributes {dimension_semantics = [#tpu.dimension_semantics<parallel>, #tpu.dimension_semantics<parallel>, #tpu.dimension_semantics<arbitrary>], iteration_bounds = array<i64: 2, 1, 1>, scalar_prefetch = 0 : i64, scratch_operands = 2 : i64, tpu.core_type = #tpu.core_type<tc>, window_params = [{transform_indices = @transform_0, window_bounds = array<i64: 8, 256>}, {transform_indices = @transform_1, window_bounds = array<i64: 8, 256>}, {transform_indices = @transform_2, window_bounds = array<i64: 8, 256>}, {transform_indices = @transform_3, window_bounds = array<i64: 8, 256>}, {transform_indices = @transform_4, window_bounds = array<i64: 256, 128>}, {transform_indices = @transform_5, window_bounds = array<i64: 256, 128>}, {transform_indices = @transform_6, window_bounds = array<i64: 256, 128>}, {transform_indices = @transform_7, window_bounds = array<i64: 256, 128>}, {transform_indices = @transform_8, window_bounds = array<i64: 4, 1, 128>}, {transform_indices = @transform_9, window_bounds = array<i64: 8, 4, 128>}]} {
    %c0 = arith.constant 0 : index
    %c0_0 = arith.constant 0 : index
    %0 = vector.load %arg3[%c0, %c0_0] : memref<8x256xf32, #tpu.memory_space<vmem>>, vector<8x256xf32>
    %c0_1 = arith.constant 0 : index
    %c0_2 = arith.constant 0 : index
    %1 = vector.load %arg14[%c0_1, %c0_2] : memref<32x256xf32, #tpu.memory_space<vmem>>, vector<8x256xf32>
    tpu.vector_store %arg14[%c0_1, %c0_2], %0 {strides = array<i32>} : memref<32x256xf32, #tpu.memory_space<vmem>>, vector<8x256xf32>,
    %c0_3 = arith.constant 0 : index
    %c0_4 = arith.constant 0 : index
    %2 = vector.load %arg4[%c0_3, %c0_4] : memref<8x256xf32, #tpu.memory_space<vmem>>, vector<8x256xf32>
    %c8 = arith.constant 8 : index
    %c0_5 = arith.constant 0 : index
    %3 = vector.load %arg14[%c8, %c0_5] : memref<32x256xf32, #tpu.memory_space<vmem>>, vector<8x256xf32>
    tpu.vector_store %arg14[%c8, %c0_5], %2 {strides = array<i32>} : memref<32x256xf32, #tpu.memory_space<vmem>>, vector<8x256xf32>,
    %c0_6 = arith.constant 0 : index
    %c0_7 = arith.constant 0 : index
    %4 = vector.load %arg5[%c0_6, %c0_7] : memref<8x256xf32, #tpu.memory_space<vmem>>, vector<8x256xf32>
    %c16 = arith.constant 16 : index
    %c0_8 = arith.constant 0 : index
    %5 = vector.load %arg14[%c16, %c0_8] : memref<32x256xf32, #tpu.memory_space<vmem>>, vector<8x256xf32>
    tpu.vector_store %arg14[%c16, %c0_8], %4 {strides = array<i32>} : memref<32x256xf32, #tpu.memory_space<vmem>>, vector<8x256xf32>,
    %c0_9 = arith.constant 0 : index
    %c0_10 = arith.constant 0 : index
    %6 = vector.load %arg6[%c0_9, %c0_10] : memref<8x256xf32, #tpu.memory_space<vmem>>, vector<8x256xf32>
    %c24 = arith.constant 24 : index
    %c0_11 = arith.constant 0 : index
    %7 = vector.load %arg14[%c24, %c0_11] : memref<32x256xf32, #tpu.memory_space<vmem>>, vector<8x256xf32>
    tpu.vector_store %arg14[%c24, %c0_11], %6 {strides = array<i32>} : memref<32x256xf32, #tpu.memory_space<vmem>>, vector<8x256xf32>,
    %c0_12 = arith.constant 0 : index
    %c0_13 = arith.constant 0 : index
    %8 = vector.load %arg14[%c0_12, %c0_13] : memref<32x256xf32, #tpu.memory_space<vmem>>, vector<32x256xf32>
    %c0_14 = arith.constant 0 : index
    %c0_15 = arith.constant 0 : index
    %9 = vector.load %arg7[%c0_14, %c0_15] : memref<256x128xf32, #tpu.memory_space<vmem>>, vector<256x128xf32>
    %cst = arith.constant dense<0.000000e+00> : vector<32x128xf32>
    %10 = tpu.matmul %8, %9, %cst {dimension_numbers = #tpu.dot_dimension_numbers<[1], [0], [0], [1], [0, 0, 1, 1], [], []>} : vector<32x256xf32>, vector<256x128xf32>, vector<32x128xf32> -> vector<32x128xf32>
    %c0_i32 = arith.constant 0 : i32
    %11 = arith.cmpi eq, %arg2, %c0_i32 : i32
    %12 = arith.extui %11 : i1 to i32
    %c0_i32_16 = arith.constant 0 : i32
    %13 = arith.cmpi ne, %12, %c0_i32_16 : i32
    scf.if %13 {
      %110 = vector.extract_strided_slice %10 {offsets = [0, 0], sizes = [8, 128], strides = [1, 1]} : vector<32x128xf32> to vector<8x128xf32>
      %c0_99 = arith.constant 0 : index
      %c0_100 = arith.constant 0 : index
      %c0_101 = arith.constant 0 : index
      %111 = vector.load %arg13[%c0_99, %c0_100, %c0_101] : memref<4x8x128xf32, #tpu.memory_space<vmem>>, vector<1x8x128xf32>
      %112 = vector.shape_cast %111 : vector<1x8x128xf32> to vector<8x128xf32>
      %113 = vector.shape_cast %110 : vector<8x128xf32> to vector<1x8x128xf32>
      tpu.vector_store %arg13[%c0_99, %c0_100, %c0_101], %113 {strides = array<i32>} : memref<4x8x128xf32, #tpu.memory_space<vmem>>, vector<1x8x128xf32>,
      %114 = vector.extract_strided_slice %10 {offsets = [8, 0], sizes = [8, 128], strides = [1, 1]} : vector<32x128xf32> to vector<8x128xf32>
      %c1_102 = arith.constant 1 : index
      %c0_103 = arith.constant 0 : index
      %c0_104 = arith.constant 0 : index
      %115 = vector.load %arg13[%c1_102, %c0_103, %c0_104] : memref<4x8x128xf32, #tpu.memory_space<vmem>>, vector<1x8x128xf32>
      %116 = vector.shape_cast %115 : vector<1x8x128xf32> to vector<8x128xf32>
      %117 = vector.shape_cast %114 : vector<8x128xf32> to vector<1x8x128xf32>
      tpu.vector_store %arg13[%c1_102, %c0_103, %c0_104], %117 {strides = array<i32>} : memref<4x8x128xf32, #tpu.memory_space<vmem>>, vector<1x8x128xf32>,
      %118 = vector.extract_strided_slice %10 {offsets = [16, 0], sizes = [8, 128], strides = [1, 1]} : vector<32x128xf32> to vector<8x128xf32>
      %c2_105 = arith.constant 2 : index
      %c0_106 = arith.constant 0 : index
      %c0_107 = arith.constant 0 : index
      %119 = vector.load %arg13[%c2_105, %c0_106, %c0_107] : memref<4x8x128xf32, #tpu.memory_space<vmem>>, vector<1x8x128xf32>
      %120 = vector.shape_cast %119 : vector<1x8x128xf32> to vector<8x128xf32>
      %121 = vector.shape_cast %118 : vector<8x128xf32> to vector<1x8x128xf32>
      tpu.vector_store %arg13[%c2_105, %c0_106, %c0_107], %121 {strides = array<i32>} : memref<4x8x128xf32, #tpu.memory_space<vmem>>, vector<1x8x128xf32>,
      %122 = vector.extract_strided_slice %10 {offsets = [24, 0], sizes = [8, 128], strides = [1, 1]} : vector<32x128xf32> to vector<8x128xf32>
      %c3_108 = arith.constant 3 : index
      %c0_109 = arith.constant 0 : index
      %c0_110 = arith.constant 0 : index
      %123 = vector.load %arg13[%c3_108, %c0_109, %c0_110] : memref<4x8x128xf32, #tpu.memory_space<vmem>>, vector<1x8x128xf32>
      %124 = vector.shape_cast %123 : vector<1x8x128xf32> to vector<8x128xf32>
      %125 = vector.shape_cast %122 : vector<8x128xf32> to vector<1x8x128xf32>
      tpu.vector_store %arg13[%c3_108, %c0_109, %c0_110], %125 {strides = array<i32>} : memref<4x8x128xf32, #tpu.memory_space<vmem>>, vector<1x8x128xf32>,
    } else {
    }
    %c0_i32_17 = arith.constant 0 : i32
    %14 = arith.cmpi ne, %arg2, %c0_i32_17 : i32
    %15 = arith.extui %14 : i1 to i32
    %c0_i32_18 = arith.constant 0 : i32
    %16 = arith.cmpi ne, %15, %c0_i32_18 : i32
    scf.if %16 {
      %c0_99 = arith.constant 0 : index
      %c0_100 = arith.constant 0 : index
      %c0_101 = arith.constant 0 : index
      %110 = vector.load %arg13[%c0_99, %c0_100, %c0_101] : memref<4x8x128xf32, #tpu.memory_space<vmem>>, vector<1x8x128xf32>
      %111 = vector.shape_cast %110 : vector<1x8x128xf32> to vector<8x128xf32>
      %112 = vector.extract_strided_slice %10 {offsets = [0, 0], sizes = [8, 128], strides = [1, 1]} : vector<32x128xf32> to vector<8x128xf32>
      %113 = arith.addf %111, %112 : vector<8x128xf32>
      %c0_102 = arith.constant 0 : index
      %c0_103 = arith.constant 0 : index
      %c0_104 = arith.constant 0 : index
      %114 = vector.load %arg13[%c0_102, %c0_103, %c0_104] : memref<4x8x128xf32, #tpu.memory_space<vmem>>, vector<1x8x128xf32>
      %115 = vector.shape_cast %114 : vector<1x8x128xf32> to vector<8x128xf32>
      %116 = vector.shape_cast %113 : vector<8x128xf32> to vector<1x8x128xf32>
      tpu.vector_store %arg13[%c0_102, %c0_103, %c0_104], %116 {strides = array<i32>} : memref<4x8x128xf32, #tpu.memory_space<vmem>>, vector<1x8x128xf32>,
      %c1_105 = arith.constant 1 : index
      %c0_106 = arith.constant 0 : index
      %c0_107 = arith.constant 0 : index
      %117 = vector.load %arg13[%c1_105, %c0_106, %c0_107] : memref<4x8x128xf32, #tpu.memory_space<vmem>>, vector<1x8x128xf32>
      %118 = vector.shape_cast %117 : vector<1x8x128xf32> to vector<8x128xf32>
      %119 = vector.extract_strided_slice %10 {offsets = [8, 0], sizes = [8, 128], strides = [1, 1]} : vector<32x128xf32> to vector<8x128xf32>
      %120 = arith.addf %118, %119 : vector<8x128xf32>
      %c1_108 = arith.constant 1 : index
      %c0_109 = arith.constant 0 : index
      %c0_110 = arith.constant 0 : index
      %121 = vector.load %arg13[%c1_108, %c0_109, %c0_110] : memref<4x8x128xf32, #tpu.memory_space<vmem>>, vector<1x8x128xf32>
      %122 = vector.shape_cast %121 : vector<1x8x128xf32> to vector<8x128xf32>
      %123 = vector.shape_cast %120 : vector<8x128xf32> to vector<1x8x128xf32>
      tpu.vector_store %arg13[%c1_108, %c0_109, %c0_110], %123 {strides = array<i32>} : memref<4x8x128xf32, #tpu.memory_space<vmem>>, vector<1x8x128xf32>,
      %c2_111 = arith.constant 2 : index
      %c0_112 = arith.constant 0 : index
      %c0_113 = arith.constant 0 : index
      %124 = vector.load %arg13[%c2_111, %c0_112, %c0_113] : memref<4x8x128xf32, #tpu.memory_space<vmem>>, vector<1x8x128xf32>
      %125 = vector.shape_cast %124 : vector<1x8x128xf32> to vector<8x128xf32>
      %126 = vector.extract_strided_slice %10 {offsets = [16, 0], sizes = [8, 128], strides = [1, 1]} : vector<32x128xf32> to vector<8x128xf32>
      %127 = arith.addf %125, %126 : vector<8x128xf32>
      %c2_114 = arith.constant 2 : index
      %c0_115 = arith.constant 0 : index
      %c0_116 = arith.constant 0 : index
      %128 = vector.load %arg13[%c2_114, %c0_115, %c0_116] : memref<4x8x128xf32, #tpu.memory_space<vmem>>, vector<1x8x128xf32>
      %129 = vector.shape_cast %128 : vector<1x8x128xf32> to vector<8x128xf32>
      %130 = vector.shape_cast %127 : vector<8x128xf32> to vector<1x8x128xf32>
      tpu.vector_store %arg13[%c2_114, %c0_115, %c0_116], %130 {strides = array<i32>} : memref<4x8x128xf32, #tpu.memory_space<vmem>>, vector<1x8x128xf32>,
      %c3_117 = arith.constant 3 : index
      %c0_118 = arith.constant 0 : index
      %c0_119 = arith.constant 0 : index
      %131 = vector.load %arg13[%c3_117, %c0_118, %c0_119] : memref<4x8x128xf32, #tpu.memory_space<vmem>>, vector<1x8x128xf32>
      %132 = vector.shape_cast %131 : vector<1x8x128xf32> to vector<8x128xf32>
      %133 = vector.extract_strided_slice %10 {offsets = [24, 0], sizes = [8, 128], strides = [1, 1]} : vector<32x128xf32> to vector<8x128xf32>
      %134 = arith.addf %132, %133 : vector<8x128xf32>
      %c3_120 = arith.constant 3 : index
      %c0_121 = arith.constant 0 : index
      %c0_122 = arith.constant 0 : index
      %135 = vector.load %arg13[%c3_120, %c0_121, %c0_122] : memref<4x8x128xf32, #tpu.memory_space<vmem>>, vector<1x8x128xf32>
      %136 = vector.shape_cast %135 : vector<1x8x128xf32> to vector<8x128xf32>
      %137 = vector.shape_cast %134 : vector<8x128xf32> to vector<1x8x128xf32>
      tpu.vector_store %arg13[%c3_120, %c0_121, %c0_122], %137 {strides = array<i32>} : memref<4x8x128xf32, #tpu.memory_space<vmem>>, vector<1x8x128xf32>,
    } else {
    }
    %c0_19 = arith.constant 0 : index
    %c0_20 = arith.constant 0 : index
    %17 = vector.load %arg8[%c0_19, %c0_20] : memref<256x128xf32, #tpu.memory_space<vmem>>, vector<256x128xf32>
    %cst_21 = arith.constant dense<0.000000e+00> : vector<32x128xf32>
    %18 = tpu.matmul %8, %17, %cst_21 {dimension_numbers = #tpu.dot_dimension_numbers<[1], [0], [0], [1], [0, 0, 1, 1], [], []>} : vector<32x256xf32>, vector<256x128xf32>, vector<32x128xf32> -> vector<32x128xf32>
    %19 = vector.extract_strided_slice %18 {offsets = [0, 0], sizes = [8, 128], strides = [1, 1]} : vector<32x128xf32> to vector<8x128xf32>
    %c1 = arith.constant 1 : index
    %c0_22 = arith.constant 0 : index
    %c0_23 = arith.constant 0 : index
    %20 = vector.load %arg13[%c1, %c0_22, %c0_23] : memref<4x8x128xf32, #tpu.memory_space<vmem>>, vector<1x8x128xf32>
    %21 = vector.shape_cast %20 : vector<1x8x128xf32> to vector<8x128xf32>
    %22 = arith.addf %21, %19 : vector<8x128xf32>
    %c1_24 = arith.constant 1 : index
    %c0_25 = arith.constant 0 : index
    %c0_26 = arith.constant 0 : index
    %23 = vector.load %arg13[%c1_24, %c0_25, %c0_26] : memref<4x8x128xf32, #tpu.memory_space<vmem>>, vector<1x8x128xf32>
    %24 = vector.shape_cast %23 : vector<1x8x128xf32> to vector<8x128xf32>
    %25 = vector.shape_cast %22 : vector<8x128xf32> to vector<1x8x128xf32>
    tpu.vector_store %arg13[%c1_24, %c0_25, %c0_26], %25 {strides = array<i32>} : memref<4x8x128xf32, #tpu.memory_space<vmem>>, vector<1x8x128xf32>,
    %26 = vector.extract_strided_slice %18 {offsets = [8, 0], sizes = [8, 128], strides = [1, 1]} : vector<32x128xf32> to vector<8x128xf32>
    %c0_27 = arith.constant 0 : index
    %c0_28 = arith.constant 0 : index
    %c0_29 = arith.constant 0 : index
    %27 = vector.load %arg13[%c0_27, %c0_28, %c0_29] : memref<4x8x128xf32, #tpu.memory_space<vmem>>, vector<1x8x128xf32>
    %28 = vector.shape_cast %27 : vector<1x8x128xf32> to vector<8x128xf32>
    %29 = arith.subf %28, %26 : vector<8x128xf32>
    %c0_30 = arith.constant 0 : index
    %c0_31 = arith.constant 0 : index
    %c0_32 = arith.constant 0 : index
    %30 = vector.load %arg13[%c0_30, %c0_31, %c0_32] : memref<4x8x128xf32, #tpu.memory_space<vmem>>, vector<1x8x128xf32>
    %31 = vector.shape_cast %30 : vector<1x8x128xf32> to vector<8x128xf32>
    %32 = vector.shape_cast %29 : vector<8x128xf32> to vector<1x8x128xf32>
    tpu.vector_store %arg13[%c0_30, %c0_31, %c0_32], %32 {strides = array<i32>} : memref<4x8x128xf32, #tpu.memory_space<vmem>>, vector<1x8x128xf32>,
    %33 = vector.extract_strided_slice %18 {offsets = [16, 0], sizes = [8, 128], strides = [1, 1]} : vector<32x128xf32> to vector<8x128xf32>
    %c3 = arith.constant 3 : index
    %c0_33 = arith.constant 0 : index
    %c0_34 = arith.constant 0 : index
    %34 = vector.load %arg13[%c3, %c0_33, %c0_34] : memref<4x8x128xf32, #tpu.memory_space<vmem>>, vector<1x8x128xf32>
    %35 = vector.shape_cast %34 : vector<1x8x128xf32> to vector<8x128xf32>
    %36 = arith.addf %35, %33 : vector<8x128xf32>
    %c3_35 = arith.constant 3 : index
    %c0_36 = arith.constant 0 : index
    %c0_37 = arith.constant 0 : index
    %37 = vector.load %arg13[%c3_35, %c0_36, %c0_37] : memref<4x8x128xf32, #tpu.memory_space<vmem>>, vector<1x8x128xf32>
    %38 = vector.shape_cast %37 : vector<1x8x128xf32> to vector<8x128xf32>
    %39 = vector.shape_cast %36 : vector<8x128xf32> to vector<1x8x128xf32>
    tpu.vector_store %arg13[%c3_35, %c0_36, %c0_37], %39 {strides = array<i32>} : memref<4x8x128xf32, #tpu.memory_space<vmem>>, vector<1x8x128xf32>,
    %40 = vector.extract_strided_slice %18 {offsets = [24, 0], sizes = [8, 128], strides = [1, 1]} : vector<32x128xf32> to vector<8x128xf32>
    %c2 = arith.constant 2 : index
    %c0_38 = arith.constant 0 : index
    %c0_39 = arith.constant 0 : index
    %41 = vector.load %arg13[%c2, %c0_38, %c0_39] : memref<4x8x128xf32, #tpu.memory_space<vmem>>, vector<1x8x128xf32>
    %42 = vector.shape_cast %41 : vector<1x8x128xf32> to vector<8x128xf32>
    %43 = arith.subf %42, %40 : vector<8x128xf32>
    %c2_40 = arith.constant 2 : index
    %c0_41 = arith.constant 0 : index
    %c0_42 = arith.constant 0 : index
    %44 = vector.load %arg13[%c2_40, %c0_41, %c0_42] : memref<4x8x128xf32, #tpu.memory_space<vmem>>, vector<1x8x128xf32>
    %45 = vector.shape_cast %44 : vector<1x8x128xf32> to vector<8x128xf32>
    %46 = vector.shape_cast %43 : vector<8x128xf32> to vector<1x8x128xf32>
    tpu.vector_store %arg13[%c2_40, %c0_41, %c0_42], %46 {strides = array<i32>} : memref<4x8x128xf32, #tpu.memory_space<vmem>>, vector<1x8x128xf32>,
    %c0_43 = arith.constant 0 : index
    %c0_44 = arith.constant 0 : index
    %47 = vector.load %arg9[%c0_43, %c0_44] : memref<256x128xf32, #tpu.memory_space<vmem>>, vector<256x128xf32>
    %cst_45 = arith.constant dense<0.000000e+00> : vector<32x128xf32>
    %48 = tpu.matmul %8, %47, %cst_45 {dimension_numbers = #tpu.dot_dimension_numbers<[1], [0], [0], [1], [0, 0, 1, 1], [], []>} : vector<32x256xf32>, vector<256x128xf32>, vector<32x128xf32> -> vector<32x128xf32>
    %49 = vector.extract_strided_slice %48 {offsets = [0, 0], sizes = [8, 128], strides = [1, 1]} : vector<32x128xf32> to vector<8x128xf32>
    %c2_46 = arith.constant 2 : index
    %c0_47 = arith.constant 0 : index
    %c0_48 = arith.constant 0 : index
    %50 = vector.load %arg13[%c2_46, %c0_47, %c0_48] : memref<4x8x128xf32, #tpu.memory_space<vmem>>, vector<1x8x128xf32>
    %51 = vector.shape_cast %50 : vector<1x8x128xf32> to vector<8x128xf32>
    %52 = arith.addf %51, %49 : vector<8x128xf32>
    %c2_49 = arith.constant 2 : index
    %c0_50 = arith.constant 0 : index
    %c0_51 = arith.constant 0 : index
    %53 = vector.load %arg13[%c2_49, %c0_50, %c0_51] : memref<4x8x128xf32, #tpu.memory_space<vmem>>, vector<1x8x128xf32>
    %54 = vector.shape_cast %53 : vector<1x8x128xf32> to vector<8x128xf32>
    %55 = vector.shape_cast %52 : vector<8x128xf32> to vector<1x8x128xf32>
    tpu.vector_store %arg13[%c2_49, %c0_50, %c0_51], %55 {strides = array<i32>} : memref<4x8x128xf32, #tpu.memory_space<vmem>>, vector<1x8x128xf32>,
    %56 = vector.extract_strided_slice %48 {offsets = [8, 0], sizes = [8, 128], strides = [1, 1]} : vector<32x128xf32> to vector<8x128xf32>
    %c3_52 = arith.constant 3 : index
    %c0_53 = arith.constant 0 : index
    %c0_54 = arith.constant 0 : index
    %57 = vector.load %arg13[%c3_52, %c0_53, %c0_54] : memref<4x8x128xf32, #tpu.memory_space<vmem>>, vector<1x8x128xf32>
    %58 = vector.shape_cast %57 : vector<1x8x128xf32> to vector<8x128xf32>
    %59 = arith.subf %58, %56 : vector<8x128xf32>
    %c3_55 = arith.constant 3 : index
    %c0_56 = arith.constant 0 : index
    %c0_57 = arith.constant 0 : index
    %60 = vector.load %arg13[%c3_55, %c0_56, %c0_57] : memref<4x8x128xf32, #tpu.memory_space<vmem>>, vector<1x8x128xf32>
    %61 = vector.shape_cast %60 : vector<1x8x128xf32> to vector<8x128xf32>
    %62 = vector.shape_cast %59 : vector<8x128xf32> to vector<1x8x128xf32>
    tpu.vector_store %arg13[%c3_55, %c0_56, %c0_57], %62 {strides = array<i32>} : memref<4x8x128xf32, #tpu.memory_space<vmem>>, vector<1x8x128xf32>,
    %63 = vector.extract_strided_slice %48 {offsets = [16, 0], sizes = [8, 128], strides = [1, 1]} : vector<32x128xf32> to vector<8x128xf32>
    %c0_58 = arith.constant 0 : index
    %c0_59 = arith.constant 0 : index
    %c0_60 = arith.constant 0 : index
    %64 = vector.load %arg13[%c0_58, %c0_59, %c0_60] : memref<4x8x128xf32, #tpu.memory_space<vmem>>, vector<1x8x128xf32>
    %65 = vector.shape_cast %64 : vector<1x8x128xf32> to vector<8x128xf32>
    %66 = arith.subf %65, %63 : vector<8x128xf32>
    %c0_61 = arith.constant 0 : index
    %c0_62 = arith.constant 0 : index
    %c0_63 = arith.constant 0 : index
    %67 = vector.load %arg13[%c0_61, %c0_62, %c0_63] : memref<4x8x128xf32, #tpu.memory_space<vmem>>, vector<1x8x128xf32>
    %68 = vector.shape_cast %67 : vector<1x8x128xf32> to vector<8x128xf32>
    %69 = vector.shape_cast %66 : vector<8x128xf32> to vector<1x8x128xf32>
    tpu.vector_store %arg13[%c0_61, %c0_62, %c0_63], %69 {strides = array<i32>} : memref<4x8x128xf32, #tpu.memory_space<vmem>>, vector<1x8x128xf32>,
    %70 = vector.extract_strided_slice %48 {offsets = [24, 0], sizes = [8, 128], strides = [1, 1]} : vector<32x128xf32> to vector<8x128xf32>
    %c1_64 = arith.constant 1 : index
    %c0_65 = arith.constant 0 : index
    %c0_66 = arith.constant 0 : index
    %71 = vector.load %arg13[%c1_64, %c0_65, %c0_66] : memref<4x8x128xf32, #tpu.memory_space<vmem>>, vector<1x8x128xf32>
    %72 = vector.shape_cast %71 : vector<1x8x128xf32> to vector<8x128xf32>
    %73 = arith.addf %72, %70 : vector<8x128xf32>
    %c1_67 = arith.constant 1 : index
    %c0_68 = arith.constant 0 : index
    %c0_69 = arith.constant 0 : index
    %74 = vector.load %arg13[%c1_67, %c0_68, %c0_69] : memref<4x8x128xf32, #tpu.memory_space<vmem>>, vector<1x8x128xf32>
    %75 = vector.shape_cast %74 : vector<1x8x128xf32> to vector<8x128xf32>
    %76 = vector.shape_cast %73 : vector<8x128xf32> to vector<1x8x128xf32>
    tpu.vector_store %arg13[%c1_67, %c0_68, %c0_69], %76 {strides = array<i32>} : memref<4x8x128xf32, #tpu.memory_space<vmem>>, vector<1x8x128xf32>,
    %c0_70 = arith.constant 0 : index
    %c0_71 = arith.constant 0 : index
    %77 = vector.load %arg10[%c0_70, %c0_71] : memref<256x128xf32, #tpu.memory_space<vmem>>, vector<256x128xf32>
    %cst_72 = arith.constant dense<0.000000e+00> : vector<32x128xf32>
    %78 = tpu.matmul %8, %77, %cst_72 {dimension_numbers = #tpu.dot_dimension_numbers<[1], [0], [0], [1], [0, 0, 1, 1], [], []>} : vector<32x256xf32>, vector<256x128xf32>, vector<32x128xf32> -> vector<32x128xf32>
    %79 = vector.extract_strided_slice %78 {offsets = [0, 0], sizes = [8, 128], strides = [1, 1]} : vector<32x128xf32> to vector<8x128xf32>
    %c3_73 = arith.constant 3 : index
    %c0_74 = arith.constant 0 : index
    %c0_75 = arith.constant 0 : index
    %80 = vector.load %arg13[%c3_73, %c0_74, %c0_75] : memref<4x8x128xf32, #tpu.memory_space<vmem>>, vector<1x8x128xf32>
    %81 = vector.shape_cast %80 : vector<1x8x128xf32> to vector<8x128xf32>
    %82 = arith.addf %81, %79 : vector<8x128xf32>
    %c3_76 = arith.constant 3 : index
    %c0_77 = arith.constant 0 : index
    %c0_78 = arith.constant 0 : index
    %83 = vector.load %arg13[%c3_76, %c0_77, %c0_78] : memref<4x8x128xf32, #tpu.memory_space<vmem>>, vector<1x8x128xf32>
    %84 = vector.shape_cast %83 : vector<1x8x128xf32> to vector<8x128xf32>
    %85 = vector.shape_cast %82 : vector<8x128xf32> to vector<1x8x128xf32>
    tpu.vector_store %arg13[%c3_76, %c0_77, %c0_78], %85 {strides = array<i32>} : memref<4x8x128xf32, #tpu.memory_space<vmem>>, vector<1x8x128xf32>,
    %86 = vector.extract_strided_slice %78 {offsets = [8, 0], sizes = [8, 128], strides = [1, 1]} : vector<32x128xf32> to vector<8x128xf32>
    %c2_79 = arith.constant 2 : index
    %c0_80 = arith.constant 0 : index
    %c0_81 = arith.constant 0 : index
    %87 = vector.load %arg13[%c2_79, %c0_80, %c0_81] : memref<4x8x128xf32, #tpu.memory_space<vmem>>, vector<1x8x128xf32>
    %88 = vector.shape_cast %87 : vector<1x8x128xf32> to vector<8x128xf32>
    %89 = arith.addf %88, %86 : vector<8x128xf32>
    %c2_82 = arith.constant 2 : index
    %c0_83 = arith.constant 0 : index
    %c0_84 = arith.constant 0 : index
    %90 = vector.load %arg13[%c2_82, %c0_83, %c0_84] : memref<4x8x128xf32, #tpu.memory_space<vmem>>, vector<1x8x128xf32>
    %91 = vector.shape_cast %90 : vector<1x8x128xf32> to vector<8x128xf32>
    %92 = vector.shape_cast %89 : vector<8x128xf32> to vector<1x8x128xf32>
    tpu.vector_store %arg13[%c2_82, %c0_83, %c0_84], %92 {strides = array<i32>} : memref<4x8x128xf32, #tpu.memory_space<vmem>>, vector<1x8x128xf32>,
    %93 = vector.extract_strided_slice %78 {offsets = [16, 0], sizes = [8, 128], strides = [1, 1]} : vector<32x128xf32> to vector<8x128xf32>
    %c1_85 = arith.constant 1 : index
    %c0_86 = arith.constant 0 : index
    %c0_87 = arith.constant 0 : index
    %94 = vector.load %arg13[%c1_85, %c0_86, %c0_87] : memref<4x8x128xf32, #tpu.memory_space<vmem>>, vector<1x8x128xf32>
    %95 = vector.shape_cast %94 : vector<1x8x128xf32> to vector<8x128xf32>
    %96 = arith.subf %95, %93 : vector<8x128xf32>
    %c1_88 = arith.constant 1 : index
    %c0_89 = arith.constant 0 : index
    %c0_90 = arith.constant 0 : index
    %97 = vector.load %arg13[%c1_88, %c0_89, %c0_90] : memref<4x8x128xf32, #tpu.memory_space<vmem>>, vector<1x8x128xf32>
    %98 = vector.shape_cast %97 : vector<1x8x128xf32> to vector<8x128xf32>
    %99 = vector.shape_cast %96 : vector<8x128xf32> to vector<1x8x128xf32>
    tpu.vector_store %arg13[%c1_88, %c0_89, %c0_90], %99 {strides = array<i32>} : memref<4x8x128xf32, #tpu.memory_space<vmem>>, vector<1x8x128xf32>,
    %100 = vector.extract_strided_slice %78 {offsets = [24, 0], sizes = [8, 128], strides = [1, 1]} : vector<32x128xf32> to vector<8x128xf32>
    %c0_91 = arith.constant 0 : index
    %c0_92 = arith.constant 0 : index
    %c0_93 = arith.constant 0 : index
    %101 = vector.load %arg13[%c0_91, %c0_92, %c0_93] : memref<4x8x128xf32, #tpu.memory_space<vmem>>, vector<1x8x128xf32>
    %102 = vector.shape_cast %101 : vector<1x8x128xf32> to vector<8x128xf32>
    %103 = arith.subf %102, %100 : vector<8x128xf32>
    %c0_94 = arith.constant 0 : index
    %c0_95 = arith.constant 0 : index
    %c0_96 = arith.constant 0 : index
    %104 = vector.load %arg13[%c0_94, %c0_95, %c0_96] : memref<4x8x128xf32, #tpu.memory_space<vmem>>, vector<1x8x128xf32>
    %105 = vector.shape_cast %104 : vector<1x8x128xf32> to vector<8x128xf32>
    %106 = vector.shape_cast %103 : vector<8x128xf32> to vector<1x8x128xf32>
    tpu.vector_store %arg13[%c0_94, %c0_95, %c0_96], %106 {strides = array<i32>} : memref<4x8x128xf32, #tpu.memory_space<vmem>>, vector<1x8x128xf32>,
    %c0_i32_97 = arith.constant 0 : i32
    %107 = arith.cmpi eq, %arg2, %c0_i32_97 : i32
    %108 = arith.extui %107 : i1 to i32
    %c0_i32_98 = arith.constant 0 : i32
    %109 = arith.cmpi ne, %108, %c0_i32_98 : i32
    scf.if %109 {
      %c0_99 = arith.constant 0 : index
      %c0_100 = arith.constant 0 : index
      %c0_101 = arith.constant 0 : index
      %110 = vector.load %arg13[%c0_99, %c0_100, %c0_101] : memref<4x8x128xf32, #tpu.memory_space<vmem>>, vector<1x8x128xf32>
      %111 = vector.shape_cast %110 : vector<1x8x128xf32> to vector<8x128xf32>
      %c0_102 = arith.constant 0 : index
      %c0_103 = arith.constant 0 : index
      %c0_104 = arith.constant 0 : index
      %112 = vector.load %arg11[%c0_102, %c0_103, %c0_104] : memref<4x1x128xf32, #tpu.memory_space<vmem>>, vector<1x1x128xf32>
      %113 = vector.shape_cast %112 : vector<1x1x128xf32> to vector<1x128xf32>
      %114 = vector.broadcast %113 : vector<1x128xf32> to vector<8x128xf32>
      %115 = arith.addf %111, %114 : vector<8x128xf32>
      %c0_105 = arith.constant 0 : index
      %c0_106 = arith.constant 0 : index
      %c0_107 = arith.constant 0 : index
      %116 = vector.load %arg12[%c0_105, %c0_106, %c0_107] : memref<8x4x128xf32, #tpu.memory_space<vmem>>, vector<8x1x128xf32>
      %117 = vector.shape_cast %116 : vector<8x1x128xf32> to vector<8x128xf32>
      %118 = vector.shape_cast %115 : vector<8x128xf32> to vector<8x1x128xf32>
      tpu.vector_store %arg12[%c0_105, %c0_106, %c0_107], %118 {strides = array<i32>} : memref<8x4x128xf32, #tpu.memory_space<vmem>>, vector<8x1x128xf32>,
      %c1_108 = arith.constant 1 : index
      %c0_109 = arith.constant 0 : index
      %c0_110 = arith.constant 0 : index
      %119 = vector.load %arg13[%c1_108, %c0_109, %c0_110] : memref<4x8x128xf32, #tpu.memory_space<vmem>>, vector<1x8x128xf32>
      %120 = vector.shape_cast %119 : vector<1x8x128xf32> to vector<8x128xf32>
      %c1_111 = arith.constant 1 : index
      %c0_112 = arith.constant 0 : index
      %c0_113 = arith.constant 0 : index
      %121 = vector.load %arg11[%c1_111, %c0_112, %c0_113] : memref<4x1x128xf32, #tpu.memory_space<vmem>>, vector<1x1x128xf32>
      %122 = vector.shape_cast %121 : vector<1x1x128xf32> to vector<1x128xf32>
      %123 = vector.broadcast %122 : vector<1x128xf32> to vector<8x128xf32>
      %124 = arith.addf %120, %123 : vector<8x128xf32>
      %c0_114 = arith.constant 0 : index
      %c1_115 = arith.constant 1 : index
      %c0_116 = arith.constant 0 : index
      %125 = vector.load %arg12[%c0_114, %c1_115, %c0_116] : memref<8x4x128xf32, #tpu.memory_space<vmem>>, vector<8x1x128xf32>
      %126 = vector.shape_cast %125 : vector<8x1x128xf32> to vector<8x128xf32>
      %127 = vector.shape_cast %124 : vector<8x128xf32> to vector<8x1x128xf32>
      tpu.vector_store %arg12[%c0_114, %c1_115, %c0_116], %127 {strides = array<i32>} : memref<8x4x128xf32, #tpu.memory_space<vmem>>, vector<8x1x128xf32>,
      %c2_117 = arith.constant 2 : index
      %c0_118 = arith.constant 0 : index
      %c0_119 = arith.constant 0 : index
      %128 = vector.load %arg13[%c2_117, %c0_118, %c0_119] : memref<4x8x128xf32, #tpu.memory_space<vmem>>, vector<1x8x128xf32>
      %129 = vector.shape_cast %128 : vector<1x8x128xf32> to vector<8x128xf32>
      %c2_120 = arith.constant 2 : index
      %c0_121 = arith.constant 0 : index
      %c0_122 = arith.constant 0 : index
      %130 = vector.load %arg11[%c2_120, %c0_121, %c0_122] : memref<4x1x128xf32, #tpu.memory_space<vmem>>, vector<1x1x128xf32>
      %131 = vector.shape_cast %130 : vector<1x1x128xf32> to vector<1x128xf32>
      %132 = vector.broadcast %131 : vector<1x128xf32> to vector<8x128xf32>
      %133 = arith.addf %129, %132 : vector<8x128xf32>
      %c0_123 = arith.constant 0 : index
      %c2_124 = arith.constant 2 : index
      %c0_125 = arith.constant 0 : index
      %134 = vector.load %arg12[%c0_123, %c2_124, %c0_125] : memref<8x4x128xf32, #tpu.memory_space<vmem>>, vector<8x1x128xf32>
      %135 = vector.shape_cast %134 : vector<8x1x128xf32> to vector<8x128xf32>
      %136 = vector.shape_cast %133 : vector<8x128xf32> to vector<8x1x128xf32>
      tpu.vector_store %arg12[%c0_123, %c2_124, %c0_125], %136 {strides = array<i32>} : memref<8x4x128xf32, #tpu.memory_space<vmem>>, vector<8x1x128xf32>,
      %c3_126 = arith.constant 3 : index
      %c0_127 = arith.constant 0 : index
      %c0_128 = arith.constant 0 : index
      %137 = vector.load %arg13[%c3_126, %c0_127, %c0_128] : memref<4x8x128xf32, #tpu.memory_space<vmem>>, vector<1x8x128xf32>
      %138 = vector.shape_cast %137 : vector<1x8x128xf32> to vector<8x128xf32>
      %c3_129 = arith.constant 3 : index
      %c0_130 = arith.constant 0 : index
      %c0_131 = arith.constant 0 : index
      %139 = vector.load %arg11[%c3_129, %c0_130, %c0_131] : memref<4x1x128xf32, #tpu.memory_space<vmem>>, vector<1x1x128xf32>
      %140 = vector.shape_cast %139 : vector<1x1x128xf32> to vector<1x128xf32>
      %141 = vector.broadcast %140 : vector<1x128xf32> to vector<8x128xf32>
      %142 = arith.addf %138, %141 : vector<8x128xf32>
      %c0_132 = arith.constant 0 : index
      %c3_133 = arith.constant 3 : index
      %c0_134 = arith.constant 0 : index
      %143 = vector.load %arg12[%c0_132, %c3_133, %c0_134] : memref<8x4x128xf32, #tpu.memory_space<vmem>>, vector<8x1x128xf32>
      %144 = vector.shape_cast %143 : vector<8x1x128xf32> to vector<8x128xf32>
      %145 = vector.shape_cast %142 : vector<8x128xf32> to vector<8x1x128xf32>
      tpu.vector_store %arg12[%c0_132, %c3_133, %c0_134], %145 {strides = array<i32>} : memref<8x4x128xf32, #tpu.memory_space<vmem>>, vector<8x1x128xf32>,
    } else {
    }
    return
  }
  func.func @transform_0(%arg0: i32, %arg1: i32, %arg2: i32) -> (i32, i32) {
    %c0_i32 = arith.constant 0 : i32
    %0 = arith.addi %c0_i32, %arg2 : i32
    %c0_i32_0 = arith.constant 0 : i32
    return %arg0, %0 : i32, i32
  }
  func.func @transform_1(%arg0: i32, %arg1: i32, %arg2: i32) -> (i32, i32) {
    %c1_i32 = arith.constant 1 : i32
    %0 = arith.addi %c1_i32, %arg2 : i32
    %c0_i32 = arith.constant 0 : i32
    return %arg0, %0 : i32, i32
  }
  func.func @transform_2(%arg0: i32, %arg1: i32, %arg2: i32) -> (i32, i32) {
    %c2_i32 = arith.constant 2 : i32
    %0 = arith.addi %c2_i32, %arg2 : i32
    %c0_i32 = arith.constant 0 : i32
    return %arg0, %0 : i32, i32
  }
  func.func @transform_3(%arg0: i32, %arg1: i32, %arg2: i32) -> (i32, i32) {
    %c3_i32 = arith.constant 3 : i32
    %0 = arith.addi %c3_i32, %arg2 : i32
    %c0_i32 = arith.constant 0 : i32
    return %arg0, %0 : i32, i32
  }
  func.func @transform_4(%arg0: i32, %arg1: i32, %arg2: i32) -> (i32, i32) {
    %c0_i32 = arith.constant 0 : i32
    return %arg2, %arg1 : i32, i32
  }
  func.func @transform_5(%arg0: i32, %arg1: i32, %arg2: i32) -> (i32, i32) {
    %c0_i32 = arith.constant 0 : i32
    return %arg2, %arg1 : i32, i32
  }
  func.func @transform_6(%arg0: i32, %arg1: i32, %arg2: i32) -> (i32, i32) {
    %c0_i32 = arith.constant 0 : i32
    return %arg2, %arg1 : i32, i32
  }
  func.func @transform_7(%arg0: i32, %arg1: i32, %arg2: i32) -> (i32, i32) {
    %c0_i32 = arith.constant 0 : i32
    return %arg2, %arg1 : i32, i32
  }
  func.func @transform_8(%arg0: i32, %arg1: i32, %arg2: i32) -> (i32, i32, i32) {
    %c0_i32 = arith.constant 0 : i32
    %c0_i32_0 = arith.constant 0 : i32
    %c0_i32_1 = arith.constant 0 : i32
    return %c0_i32, %c0_i32_0, %arg1 : i32, i32, i32
  }
  func.func @transform_9(%arg0: i32, %arg1: i32, %arg2: i32) -> (i32, i32, i32) {
    %c0_i32 = arith.constant 0 : i32
    %c0_i32_0 = arith.constant 0 : i32
    return %arg0, %c0_i32, %arg1 : i32, i32, i32
  }
}

</mosaic_0001>

<bundles_post_ra>
// kernel: tpu_custom_call.1
= control target key start
LH: loop header
LB: loop body
LE: loop exit
PB: predicated region body
PF: predicated region fallthrough
CT: control target
= control target key end

     0   :  { %s3201_s0 = inlined_call_operand.hbm [shape: f32[16,1024], index: 0, kind: input, shape index: {}]   ;;  %s3202_s1 = inlined_call_operand.hbm [shape: f32[16,1024], index: 1, kind: input, shape index: {}]   ;;  %s3203_s2 = inlined_call_operand.hbm [shape: f32[16,1024], index: 2, kind: input, shape index: {}]   ;;  %s3204_s3 = inlined_call_operand.hbm [shape: f32[16,1024], index: 3, kind: input, shape index: {}]   ;;  %s3205_s4 = inlined_call_operand.hbm [shape: f32[256,128], index: 4, kind: input, shape index: {}]   ;;  %s3206_s5 = inlined_call_operand.hbm [shape: f32[256,128], index: 5, kind: input, shape index: {}]   ;;  %s3207_s6 = inlined_call_operand.hbm [shape: f32[256,128], index: 6, kind: input, shape index: {}]   ;;  %s3208_s7 = inlined_call_operand.hbm [shape: f32[256,128], index: 7, kind: input, shape index: {}]   ;;  %s3209_s8 = inlined_call_operand.vmem [shape: f32[4,1,128], index: 8, kind: input, shape index: {}]   ;;  %s3210_s9 = inlined_call_operand.hbm [shape: f32[16,4,128], index: 9, kind: output, shape index: {}]  }
   0x1   :  { %3237 = sst [smem:[#allocation33_spill]] %s3202_s1 }
   0x2   :  { %3238 = sst [smem:[#allocation34_spill]] %s3205_s4 }
   0x3   :  { %3239 = sst [smem:[#allocation35_spill]] %s3206_s5 }
   0x4   :  { %3240 = sst [smem:[#allocation36_spill]] %s3209_s8 }
   0x5   :  { %3241 = sst [smem:[#allocation37_spill]] %s3210_s9 }
   0x6   :  { %14 = vsyncpa [#allocation5], 0 }
   0x7   :  { %16 = vsyncpa [#allocation5 + $0x1], 0 }
   0x8   :  { %17 = vsyncpa [#allocation8], 0 }
   0x9   :  { %19 = vsyncpa [#allocation8 + $0x1], 0 }
   0xa   :  { %20 = vsyncpa [#allocation11], 0 }
   0xb   :  { %22 = vsyncpa [#allocation11 + $0x1], 0 }
   0xc   :  { %23 = vsyncpa [#allocation14], 0 }
   0xd   :  { %24 = vsyncpa [#allocation17], 0 }
   0xe   :  { %25 = vsyncpa [#allocation6], 0 }
   0xf   :  { %27 = vsyncpa [#allocation6 + $0x1], 0  ;;  %s2643_s30 = smov 0   ;;  %s2645_s10 = smov 0  }
  0x10   :  { %s2647_s11 = smov 0   ;;  %s2649_s12 = smov 0  }
  0x11   :  { %s2651_s13 = smov 0   ;;  %s2653_s14 = smov 0  }
  0x12 LB: > { %3242 = sst [smem:[#allocation26_spill]] %s2557_s30  ;;  %s2674_s15 = sadd.s32 4294967295, %s2577_s14   ;;  %s2577_s14 = sphi %s2653_s14, %s33_s14   ;;  %s2573_s13 = sphi %s2651_s13, %s3291_s13   ;;  %s2569_s12 = sphi %s2649_s12, %s3290_s12   ;;  %s2565_s11 = sphi %s2647_s11, %s3294_s11   ;;  %s2561_s10 = sphi %s2645_s10, %s3293_s10   ;;  %s2557_s30 = sphi %s2643_s30, %s3292_s30  }
  0x13   : > { %3243 = sst [smem:[#allocation27_spill]] %s2569_s12  ;;  %s1750_s16 = sadd.s32 4294967294, %s2577_s14  }
  0x14   : > { %3244 = sst [smem:[#allocation28_spill]] %s2573_s13  ;;  %p74_p0 = scmp.ne.s32.totalorder %s2561_s10, %s2557_s30 }
  0x15   : > { %p3211_p1 = scmp.eq.s32.totalorder %s2674_s15, 0  ;;  %p334_p3 = scmp.eq.s32.totalorder %s1750_s16, 1 }
  0x16   : > { %p1751_p5 = scmp.ge.s32.totalorder %s2577_s14, 1  ;;  %p341_p7 = scmp.lt.s32.totalorder %s2577_s14, 3 }
  0x17   : > { %p2683_p4 = por %p3211_p1, %p74_p0  ;;  %p2688_p6 = por %p334_p3, %p74_p0 }
  0x18   : > { %p2693_p8 = pnand %p1751_p5, %p341_p7  ;;  %s2579_s20 = smov [#allocation12]  }
  0x19   : > { %s3245_s17 = scalar_select %p2683_p4, 1, 0 }
  0x1a   : > { %s3246_s18 = scalar_select %p2688_p6, 1, 0 }
  0x1b   : > { %s3248_s19 = scalar_select %p2693_p8, 1, 0 }
  0x1c   : > { %3247 = sst [smem:[#allocation29_spill]] %s3246_s18  ;;  %s357_s21 = sshll.u32 %s2579_s20, 4  ;;  %s2697_s21 = int_to_ptr.vmem [resolvable:$true] %s357_s21 }
  0x1d   : > { %p2143_p9 = pneg %p2693_p8  ;;  %s2580_s23 = smov [#allocation13]  }
  0x1e   : > { %s374_s24 = sshll.u32 %s2580_s23, 4  ;;  %s3250_s4 = sld [smem:[#allocation34_spill]]  ;;  %s2708_s24 = int_to_ptr.vmem [resolvable:$true] %s374_s24 }
  0x1f   : > { %p2704_p11 = pnand %p2143_p9, %p3211_p1 }
  0x21   : > { %s3249_s22 = scalar_select %p2704_p11, 1, 0 }
  0x22   : > { %p2718_p13 = pneg %p2704_p11 }
  0x24   : > { %s2240_s27 = scalar_lea.hbm %s3250_s4, 4096 }
  0x25   : > { %p2241_p12 = scmp.ne.s32.totalorder %s3250_s4, %s2240_s27  ;;  %p2247_p5 = scmp.lt.u32.totalorder %s2240_s27, %s3250_s4 }
  0x26   : > { %s3251_s16 = scalar_select %p2718_p13, 1, 0 }
  0x27   : > { %p2243_p0 = pnand %p2718_p13, %p2241_p12 }
  0x29   : > { %p2244_p3 = pneg %p2243_p0 }
  0x2b   : > { %p2249_p7 = pnand %p2247_p5, %p2244_p3 }
  0x2d   : > { %2252 = shalt.err (!%p2249_p7)
}
  0x2e   : > { %s2253_s25 = scalar_lea.vmem %s2697_s21, 4096  ;;  %p2261_p2 = scmp.lt.s32.totalorder %s2697_s21, %s2697_s21 }
  0x2f   : > { %p2254_p9 = scmp.ne.s32.totalorder %s2697_s21, %s2253_s25  ;;  %p2262_p6 = scmp.lt.s32.totalorder %s2253_s25, %s2253_s25 }
  0x31   : > { %p2256_p10 = pnand %p2254_p9, %p2718_p13  ;;  %p2263_p12 = por %p2262_p6, %p2261_p2 }
  0x33   : > { %p2257_p1 = pneg %p2256_p10 }
  0x35   : > { %p2264_p0 = pnand %p2263_p12, %p2257_p1 }
  0x37   : > { %2267 = shalt.err (!%p2264_p0)
}
  0x38   : > { %s3215_s26 = smov 128   ;;  %s3217_s27 = smov 8  }
  0x39   : > { %2146 = dma.hbm_to_vmem [thread:$0]  (!%p2704_p11), %s3250_s4, 4096, %s2697_s21, [#allocation11], %s3215_s26, %s3215_s26, %s3217_s27  }
  0x3a   : > { %s3252_s5 = sld [smem:[#allocation35_spill]] }
  0x40   : > { %s2268_s25 = scalar_lea.hbm %s3252_s5, 4096 }
  0x41   : > { %p2269_p1 = scmp.ne.s32.totalorder %s3252_s5, %s2268_s25  ;;  %p2275_p10 = scmp.lt.u32.totalorder %s2268_s25, %s3252_s5 }
  0x43   : > { %p2271_p2 = pnand %p2269_p1, %p2718_p13 }
  0x45   : > { %p2272_p6 = pneg %p2271_p2 }
  0x47   : > { %p2277_p3 = pnand %p2275_p10, %p2272_p6 }
  0x49   : > { %2280 = shalt.err (!%p2277_p3)
}
  0x4a   : > { %s2281_s21 = scalar_lea.vmem %s2708_s24, 4096  ;;  %p2289_p12 = scmp.lt.s32.totalorder %s2708_s24, %s2708_s24 }
  0x4b   : > { %p2282_p5 = scmp.ne.s32.totalorder %s2708_s24, %s2281_s21  ;;  %p2290_p0 = scmp.lt.s32.totalorder %s2281_s21, %s2281_s21 }
  0x4d   : > { %p2284_p7 = pnand %p2282_p5, %p2718_p13  ;;  %p2291_p1 = por %p2290_p0, %p2289_p12 }
  0x4f   : > { %p2285_p9 = pneg %p2284_p7 }
  0x51   : > { %p2292_p2 = pnand %p2291_p1, %p2285_p9 }
  0x53   : > { %2295 = shalt.err (!%p2292_p2)
}
  0x54   : > { %2149 = dma.hbm_to_vmem [thread:$0]  (!%p2704_p11), %s3252_s5, 4096, %s2708_s24, [#allocation14], %s3215_s26, %s3215_s26, %s3217_s27  }
  0x55   : > { %s52_s12 = sadd.s32 1, %s2573_s13  ;;  %s61_s18 = sadd.s32 1, %s2565_s11 }
  0x56   : > { %p54_p6 = scmp.ge.s32.totalorder %s52_s12, 2  ;;  %p68_p10 = scmp.ne.s32.totalorder %s2565_s11, %s2561_s10 }
  0x57   : > { %p69_p3 = scmp.eq.s32.totalorder %s2577_s14, 0  ;;  %p2177_p5 = scmp.lt.s32.totalorder %s2577_s14, 2 }
  0x58   : > { %s3296_s12 = smov (%p54_p6, %s52_s12), 0  ;;  %p3254_p9 = scmp.eq.s32.totalorder %s2674_s15, 1 }
  0x59   : > { %3253 = sst [smem:[#allocation30_spill]] %s3296_s12  ;;  %p70_p7 = por %p69_p3, %p68_p10 }
  0x5a   : > { %p2778_p12 = por %p3254_p9, %p68_p10  ;;  %s56_s29 = ssub.s32 %s2573_s13, %s3296_s12 }
  0x5b   : > { %s3219_s24 = sand.u32 1, %s2565_s11   ;;  %p59_p0 = scmp.eq.s32.totalorder %s56_s29, 0 }
  0x5c   : > { %s3255_s28 = scalar_select %p2778_p12, 1, 0 }
  0x5d   : > { %s2787_s20 = sshll.u32 %s3219_s24, 4  ;;  %s2790_s23 = sshll.u32 %s2573_s13, 10 }
  0x5e   : > { %3256 = sst [smem:[#allocation31_spill]] %s3255_s28  ;;  %p2792_p1 = pnand %p2177_p5, %p70_p7 }
  0x5f   : > { %s2797_s21 = scalar_select %p59_p0, %s2565_s11, %s61_s18  }
  0x60   : > { %s3257_s25 = scalar_select %p2792_p1, 1, 0 }
  0x61   : > { %3258 = sst [smem:[#allocation32_spill]] %s2797_s21  ;;  %s3229_s9 = sand.u32 1, %s2577_s14  }
  0x62   : > { %s3259_s1 = sld [smem:[#allocation33_spill]]  ;;  %s453_s29 = scalar_lea.vmem [#allocation7], %s2787_s20 }
  0x63   : > { %s464_s4 = sshll.u32 %s453_s29, 4  ;;  %s2811_s5 = scalar_lea.sflag [#allocation8], %s3229_s9  ;;  %s2807_s4 = int_to_ptr.vmem [resolvable:$true] %s464_s4 }
  0x64   : > { %p2816_p6 = pneg %p2792_p1 }
  0x66   : > { %s3260_s18 = scalar_select %p2816_p6, 1, 0 }
  0x68   : > { %s1583_s27 = scalar_lea.hbm %s3259_s1, %s2790_s23  ;;  %s2301_s29 = scalar_lea.hbm %s3259_s1, 2048 }
  0x69   : > { %s2805_s24 = scalar_lea.hbm %s1583_s27, 256  ;;  %s2326_s12 = scalar_lea.hbm %s1583_s27, 512 }
  0x6a   : > { %p2297_p2 = scmp.ne.s32.totalorder %s2805_s24, %s2326_s12  ;;  %p2302_p5 = scmp.lt.u32.totalorder %s2805_s24, %s3259_s1 }
  0x6b   : > { %p2303_p7 = scmp.lt.u32.totalorder %s2301_s29, %s2326_s12  ;;  %p2305_p0 = scmp.lt.u32.totalorder %s2326_s12, %s2805_s24 }
  0x6c   : > { %p2299_p10 = pnand %p2816_p6, %p2297_p2 }
  0x6d   : > { %p2304_p9 = por %p2303_p7, %p2302_p5 }
  0x6e   : > { %p2300_p3 = pneg %p2299_p10 }
  0x6f   : > { %p2306_p12 = por %p2305_p0, %p2304_p9 }
  0x71   : > { %p2307_p4 = pnand %p2306_p12, %p2300_p3 }
  0x73   : > { %2310 = shalt.err (!%p2307_p4)
}
  0x74   : > { %s2311_s27 = scalar_lea.vmem %s2807_s4, 256  ;;  %s2583_s26 = smov [#allocation7]  }
  0x75   : > { %p2312_p2 = scmp.ne.s32.totalorder %s2807_s4, %s2311_s27  ;;  %s2316_s30 = sshll.u32 %s2583_s26, 4  ;;  %s2317_s30 = int_to_ptr.vmem [resolvable:$false] %s2316_s30 }
  0x76   : > { %s2318_s13 = scalar_lea.vmem %s2317_s30, 512  ;;  %p2319_p11 = scmp.lt.s32.totalorder %s2807_s4, %s2317_s30 }
  0x77   : > { %p2314_p10 = pnand %p2312_p2, %p2816_p6  ;;  %p2320_p13 = scmp.lt.s32.totalorder %s2318_s13, %s2311_s27 }
  0x79   : > { %p2315_p8 = pneg %p2314_p10  ;;  %p2321_p5 = por %p2320_p13, %p2319_p11 }
  0x7b   : > { %p2322_p7 = pnand %p2321_p5, %p2315_p8 }
  0x7d   : > { %2325 = shalt.err (!%p2322_p7)
}
  0x7e   : > { %2162 = dma.hbm_to_vmem [thread:$0]  (!%p2792_p1), %s2805_s24, 256, %s2807_s4, %s2811_s5  }
  0x7f   : > { %s2584_s12 = smov [#allocation15]   ;;  %s2585_s29 = smov [#allocation16]  }
  0x80   : > { %s391_s21 = sshll.u32 %s2584_s12, 4  ;;  %s408_s9 = sshll.u32 %s2585_s29, 4  ;;  %s392_s21 = int_to_ptr.vmem [resolvable:$true] %s391_s21  ;;  %s409_s9 = int_to_ptr.vmem [resolvable:$true] %s408_s9 }
  0x81   : > { %s2327_s30 = scalar_lea.hbm %s3207_s6, 4096  ;;  %p3261_p8 = scmp.ne.s32.totalorder %s3251_s16, 0 }
  0x82   : > { %p2328_p4 = scmp.ne.s32.totalorder %s3207_s6, %s2327_s30  ;;  %p2334_p12 = scmp.lt.u32.totalorder %s2327_s30, %s3207_s6 }
  0x84   : > { %p2330_p11 = pnand %p2328_p4, %p3261_p8 }
  0x86   : > { %p2331_p13 = pneg %p2330_p11 }
  0x88   : > { %p2336_p3 = pnand %p2334_p12, %p2331_p13 }
  0x8a   : > { %2339 = shalt.err (!%p2336_p3)
}
  0x8b   : > { %s2340_s4 = scalar_lea.vmem %s392_s21, 4096  ;;  %p2348_p10 = scmp.lt.s32.totalorder %s392_s21, %s392_s21 }
  0x8c   : > { %p2341_p9 = scmp.ne.s32.totalorder %s392_s21, %s2340_s4  ;;  %p2349_p5 = scmp.lt.s32.totalorder %s2340_s4, %s2340_s4 }
  0x8e   : > { %p2343_p0 = pnand %p2341_p9, %p3261_p8  ;;  %p2350_p7 = por %p2349_p5, %p2348_p10 }
  0x90   : > { %p2344_p2 = pneg %p2343_p0 }
  0x92   : > { %p2351_p1 = pnand %p2350_p7, %p2344_p2 }
  0x94   : > { %2354 = shalt.err (!%p2351_p1)
}
  0x95   : > { %p3262_p4 = scmp.ne.s32.totalorder %s3249_s22, 0  ;;  %s3263_s1 = smov 8  }
  0x96   : > { %s3264_s24 = smov 128   ;;  %s2355_s26 = scalar_lea.hbm %s3208_s7, 4096 }
  0x97   : > { %2152 = dma.hbm_to_vmem [thread:$0]  (!%p3262_p4), %s3207_s6, 4096, %s392_s21, [#allocation14], %s3264_s24, %s3264_s24, %s3263_s1  }
  0x98   : > { %p2356_p11 = scmp.ne.s32.totalorder %s3208_s7, %s2355_s26  ;;  %p2362_p12 = scmp.lt.u32.totalorder %s2355_s26, %s3208_s7 }
  0x9a   : > { %p2358_p1 = pnand %p2356_p11, %p3261_p8 }
  0x9c   : > { %p2359_p13 = pneg %p2358_p1 }
  0x9e   : > { %p2364_p3 = pnand %p2362_p12, %p2359_p13 }
  0xa0   : > { %2367 = shalt.err (!%p2364_p3)
}
  0xa1   : > { %s2368_s8 = scalar_lea.vmem %s409_s9, 4096  ;;  %p2376_p10 = scmp.lt.s32.totalorder %s409_s9, %s409_s9 }
  0xa2   : > { %p2369_p9 = scmp.ne.s32.totalorder %s409_s9, %s2368_s8  ;;  %p2377_p5 = scmp.lt.s32.totalorder %s2368_s8, %s2368_s8 }
  0xa4   : > { %p2371_p0 = pnand %p2369_p9, %p3261_p8  ;;  %p2378_p7 = por %p2377_p5, %p2376_p10 }
  0xa6   : > { %p2372_p2 = pneg %p2371_p0 }
  0xa8   : > { %p2379_p6 = pnand %p2378_p7, %p2372_p2 }
  0xaa   : > { %2382 = shalt.err (!%p2379_p6)
}
  0xab   : > { %2155 = dma.hbm_to_vmem [thread:$0]  (!%p3262_p4), %s3208_s7, 4096, %s409_s9, [#allocation17], %s3264_s24, %s3264_s24, %s3263_s1  }
  0xac   : > { %s2886_s29 = scalar_lea.hbm %s3201_s0, %s2790_s23  ;;  %s432_s22 = scalar_lea.vmem [#allocation4], %s2787_s20 }
  0xad   : > { %s442_s26 = sshll.u32 %s432_s22, 4  ;;  %s2895_s13 = scalar_lea.hbm %s3203_s2, %s2790_s23  ;;  %s2889_s26 = int_to_ptr.vmem [resolvable:$true] %s442_s26 }
  0xae   : > { %s3265_s4 = sand.u32 1, %s2565_s11   ;;  %s2383_s1 = scalar_lea.hbm %s2886_s29, 256 }
  0xaf   : > { %s429_s9 = scalar_lea.sflag [#allocation5], %s3265_s4  ;;  %p2384_p6 = scmp.ne.s32.totalorder %s2886_s29, %s2383_s1 }
  0xb0   : > { %p3266_p8 = scmp.ne.s32.totalorder %s3260_s18, 0  ;;  %s2388_s21 = scalar_lea.hbm %s3201_s0, 2048 }
  0xb1   : > { %p2389_p1 = scmp.lt.u32.totalorder %s2886_s29, %s3201_s0  ;;  %p2390_p13 = scmp.lt.u32.totalorder %s2388_s21, %s2383_s1 }
  0xb2   : > { %p2386_p4 = pnand %p2384_p6, %p3266_p8  ;;  %p2392_p3 = scmp.lt.u32.totalorder %s2383_s1, %s2886_s29 }
  0xb3   : > { %p2391_p12 = por %p2390_p13, %p2389_p1 }
  0xb4   : > { %p2387_p11 = pneg %p2386_p4 }
  0xb5   : > { %p2393_p9 = por %p2392_p3, %p2391_p12 }
  0xb7   : > { %p2394_p0 = pnand %p2393_p9, %p2387_p11 }
  0xb9   : > { %2397 = shalt.err (!%p2394_p0)
}
  0xba   : > { %s2398_s12 = scalar_lea.vmem %s2889_s26, 256  ;;  %s2586_s22 = smov [#allocation4]  }
  0xbb   : > { %p2399_p2 = scmp.ne.s32.totalorder %s2889_s26, %s2398_s12  ;;  %s2403_s30 = sshll.u32 %s2586_s22, 4  ;;  %s2404_s30 = int_to_ptr.vmem [resolvable:$false] %s2403_s30 }
  0xbc   : > { %s2405_s27 = scalar_lea.vmem %s2404_s30, 512  ;;  %p2406_p7 = scmp.lt.s32.totalorder %s2889_s26, %s2404_s30 }
  0xbd   : > { %p2401_p10 = pnand %p2399_p2, %p3266_p8  ;;  %p2407_p6 = scmp.lt.s32.totalorder %s2405_s27, %s2398_s12 }
  0xbf   : > { %p2402_p5 = pneg %p2401_p10  ;;  %p2408_p4 = por %p2407_p6, %p2406_p7 }
  0xc1   : > { %p2409_p1 = pnand %p2408_p4, %p2402_p5 }
  0xc3   : > { %2412 = shalt.err (!%p2409_p1)
}
  0xc4   : > { %p3267_p11 = scmp.ne.s32.totalorder %s3257_s25, 0  ;;  %s2921_s4 = scalar_lea.hbm %s2895_s13, 512 }
  0xc5   : > { %s475_s1 = scalar_lea.vmem [#allocation9], %s2787_s20  ;;  %s2443_s8 = scalar_lea.hbm %s2895_s13, 768 }
  0xc6   : > { %2159 = dma.hbm_to_vmem [thread:$0]  (!%p3267_p11), %s2886_s29, 256, %s2889_s26, %s429_s9  }
  0xc7   : > { %s486_s24 = sshll.u32 %s475_s1, 4  ;;  %p2414_p13 = scmp.ne.s32.totalorder %s2921_s4, %s2443_s8  ;;  %s487_s24 = int_to_ptr.vmem [resolvable:$true] %s486_s24 }
  0xc8   : > { %s2418_s16 = scalar_lea.hbm %s3203_s2, 2048  ;;  %p2419_p9 = scmp.lt.u32.totalorder %s2921_s4, %s3203_s2 }
  0xc9   : > { %p2416_p12 = pnand %p2414_p13, %p3266_p8  ;;  %p2420_p0 = scmp.lt.u32.totalorder %s2418_s16, %s2443_s8 }
  0xca   : > { %p2422_p10 = scmp.lt.u32.totalorder %s2443_s8, %s2921_s4 }
  0xcb   : > { %p2417_p3 = pneg %p2416_p12  ;;  %p2421_p2 = por %p2420_p0, %p2419_p9 }
  0xcd   : > { %p2423_p5 = por %p2422_p10, %p2421_p2 }
  0xcf   : > { %p2424_p7 = pnand %p2423_p5, %p2417_p3 }
  0xd1   : > { %2427 = shalt.err (!%p2424_p7)
}
  0xd2   : > { %s2428_s29 = scalar_lea.vmem %s487_s24, 256  ;;  %s2587_s26 = smov [#allocation9]  }
  0xd3   : > { %p2429_p6 = scmp.ne.s32.totalorder %s487_s24, %s2428_s29  ;;  %s2433_s13 = sshll.u32 %s2587_s26, 4  ;;  %s2434_s13 = int_to_ptr.vmem [resolvable:$false] %s2433_s13 }
  0xd4   : > { %s2435_s9 = scalar_lea.vmem %s2434_s13, 512  ;;  %p2436_p13 = scmp.lt.s32.totalorder %s487_s24, %s2434_s13 }
  0xd5   : > { %p2431_p4 = pnand %p2429_p6, %p3266_p8  ;;  %p2437_p12 = scmp.lt.s32.totalorder %s2435_s9, %s2428_s29 }
  0xd7   : > { %p2432_p1 = pneg %p2431_p4  ;;  %p2438_p11 = por %p2437_p12, %p2436_p13 }
  0xd9   : > { %p2439_p0 = pnand %p2438_p11, %p2432_p1 }
  0xdb   : > { %2442 = shalt.err (!%p2439_p0)
}
  0xdc   : > { %p3268_p9 = scmp.ne.s32.totalorder %s3257_s25, 0  ;;  %s1601_s1 = scalar_lea.hbm %s3204_s3, %s2790_s23 }
  0xdd   : > { %s497_s8 = scalar_lea.vmem [#allocation10], %s2787_s20  ;;  %s2947_s28 = scalar_lea.hbm %s1601_s1, 768 }
  0xde   : > { %2165 = dma.hbm_to_vmem [thread:$0]  (!%p3268_p9), %s2921_s4, 256, %s487_s24, %s2811_s5  }
  0xdf   : > { %s508_s21 = sshll.u32 %s497_s8, 4  ;;  %s3269_s16 = sand.u32 1, %s2577_s14   ;;  %s509_s21 = int_to_ptr.vmem [resolvable:$true] %s508_s21 }
  0xe0   : > { %s494_s12 = scalar_lea.sflag [#allocation11], %s3269_s16  ;;  %s2474_s22 = scalar_lea.hbm %s1601_s1, 1024 }
  0xe1   : > { %p2445_p11 = scmp.ne.s32.totalorder %s2947_s28, %s2474_s22  ;;  %s2449_s24 = scalar_lea.hbm %s3204_s3, 2048 }
  0xe2   : > { %p2450_p10 = scmp.lt.u32.totalorder %s2947_s28, %s3204_s3  ;;  %p2451_p5 = scmp.lt.u32.totalorder %s2449_s24, %s2474_s22 }
  0xe3   : > { %p2447_p3 = pnand %p2445_p11, %p3266_p8  ;;  %p2453_p6 = scmp.lt.u32.totalorder %s2474_s22, %s2947_s28 }
  0xe4   : > { %p2452_p7 = por %p2451_p5, %p2450_p10 }
  0xe5   : > { %p2448_p2 = pneg %p2447_p3 }
  0xe6   : > { %p2454_p4 = por %p2453_p6, %p2452_p7 }
  0xe8   : > { %p2455_p1 = pnand %p2454_p4, %p2448_p2 }
  0xea   : > { %2458 = shalt.err (!%p2455_p1)
}
  0xeb   : > { %s2459_s29 = scalar_lea.vmem %s509_s21, 256  ;;  %s2588_s26 = smov [#allocation10]  }
  0xec   : > { %p2460_p13 = scmp.ne.s32.totalorder %s509_s21, %s2459_s29  ;;  %s2464_s13 = sshll.u32 %s2588_s26, 4  ;;  %s2465_s13 = int_to_ptr.vmem [resolvable:$false] %s2464_s13 }
  0xed   : > { %s2466_s9 = scalar_lea.vmem %s2465_s13, 512  ;;  %p2467_p11 = scmp.lt.s32.totalorder %s509_s21, %s2465_s13 }
  0xee   : > { %p2462_p12 = pnand %p2460_p13, %p3266_p8  ;;  %p2468_p3 = scmp.lt.s32.totalorder %s2466_s9, %s2459_s29 }
  0xf0   : > { %p2463_p0 = pneg %p2462_p12  ;;  %p2469_p9 = por %p2468_p3, %p2467_p11 }
  0xf2   : > { %p2470_p5 = pnand %p2469_p9, %p2463_p0 }
  0xf4   : > { %2473 = shalt.err (!%p2470_p5)
}
  0xf5   : > { %p3270_p10 = scmp.ne.s32.totalorder %s3257_s25, 0  ;;  %p3271_p2 = scmp.ne.s32.totalorder %s3248_s19, 0 }
  0xf6   : > { %s2970_s18 = sand.u32 (!%p3271_p2), 1, %s2561_s10   ;;  %p3272_p8 = scmp.ne.s32.totalorder (!%p3271_p2), %s3245_s17, 0 }
  0xf7   : > { %2168 = dma.hbm_to_vmem [thread:$0]  (!%p3270_p10), %s2947_s28, 256, %s509_s21, %s494_s12  }
  0xf8   : > { %517 = sbr.rel (%p3271_p2) target bundleno = 602 (0x25a), region = 56  ;;  %s2973_s30 = sshll.u32 (!%p3271_p2), %s2970_s18, 4 }
  0xf9   : > { %s520_s27 = scalar_lea.sflag (!%p3271_p2), [#allocation5], %s2970_s18  ;;  %s523_s1 = scalar_lea.vmem (!%p3271_p2), [#allocation4], %s2973_s30 }
  0xff   : > { %2528 = dma.done.wait (%p3272_p8), %s520_s27, 256  }
 0x100   : > { %2530 = vsyncadd (%p3272_p8), %s520_s27, 4294967040  ;;  %s528_s19 = sand.u32 1, %s2674_s15   ;;  %s532_s8 = scalar_lea.vmem [#allocation7], %s2973_s30 }
 0x101   : > { %s529_s25 = scalar_lea.sflag [#allocation8], %s528_s19 }
 0x102   : > { %2532 = dma.done.wait (%p3272_p8), %s529_s25, 512  }
 0x103   : > { %2534 = vsyncadd (%p3272_p8), %s529_s25, 4294966784  ;;  %s541_s21 = scalar_lea.vmem [#allocation9], %s2973_s30  ;;  %s547_s28 = scalar_lea.sflag [#allocation11], %s528_s19 }
 0x104   : > { %s550_s16 = scalar_lea.vmem [#allocation10], %s2973_s30 }
 0x105   : > { %2536 = dma.done.wait (%p3272_p8), %s547_s28, 256  }
 0x106   : > { %2538 = vsyncadd (%p3272_p8), %s547_s28, 4294967040  ;;  %p3273_p9 = scmp.eq.s32.totalorder %s2674_s15, 0 }
 0x108   : > { %2540 = dma.done.wait (%p3273_p9), [#allocation11], 4096   ;;  %p3274_p7 = pmov %p3273_p9 }
 0x10a   : > { %2542 = vsyncadd (%p3274_p7), [#allocation11], 4294963200  ;;  %p3275_p6 = pmov %p3274_p7 }
 0x10c   : > { %2544 = dma.done.wait (%p3275_p6), [#allocation14], 8192   ;;  %p3276_p4 = pmov %p3275_p6 }
 0x10e   : > { %2546 = vsyncadd (%p3276_p4), [#allocation14], 4294959104  ;;  %p3277_p1 = pmov %p3276_p4 }
 0x110   : > { %2548 = dma.done.wait (%p3277_p1), [#allocation17], 4096   ;;  %p3278_p13 = pmov %p3277_p1 }
 0x111   : > { %v674_v0 = vld [vmem:[#allocation12 + $0x80] sm:$0xff]  ;;  %v675_v1 = vld [vmem:[#allocation12 + $0x88] sm:$0xff]  ;;  %v676_v11 = vld [vmem:[#allocation12 + $0x90] sm:$0xff]  ;;  %s3279_s12 = sld [smem:[#allocation36_spill]]  ;;  %s1779_s5 = sshll.u32 %s2970_s18, 5 }
 0x112   : > { %2550 = vsyncadd (%p3278_p13), [#allocation17], 4294963200  ;;  %v821_v2 = vld [vmem:[#allocation13 + $0x80] sm:$0xff]  ;;  %v1989_v3 = vpack.c.bf16 %v675_v1, %v674_v0  ;;  %v822_v4 = vld [vmem:[#allocation13 + $0x88] sm:$0xff]  ;;  %s3084_s23 = scalar_lea.vmem [#allocation18], %s1779_s5  ;;  %s3281_s9 = sld [smem:[#allocation27_spill]] }
 0x113   : > { %v658_v5 = vld [vmem:[#allocation12] sm:$0xff]  ;;  %v659_v6 = vld [vmem:[#allocation12 + $0x8] sm:$0xff]  ;;  %v2021_v7 = vpack.c.bf16 %v822_v4, %v821_v2  ;;  %v677_v13 = vld [vmem:[#allocation12 + $0x98] sm:$0xff]  ;;  %s1516_s27 = sshll.u32 %s3084_s23, 4  ;;  %s1502_s28 = scalar_lea.sflag [#allocation6], %s2970_s18  ;;  %s3148_s27 = int_to_ptr.vmem [resolvable:$true] %s1516_s27 }
 0x114   : > { %v1991_v8 = vpack.c.bf16 %v659_v6, %v658_v5  ;;  %v805_v9 = vld [vmem:[#allocation13] sm:$0xff]  ;;  %v806_v10 = vld [vmem:[#allocation13 + $0x8] sm:$0xff]  ;;  %1990 = vmatprep.subr.bf16.mxu0 %v1989_v3  ;;  %v823_v14 = vld [vmem:[#allocation13 + $0x90] sm:$0xff]  ;;  %v1993_v16 = vpack.c.bf16 %v677_v13, %v676_v11  ;;  %s2590_s15 = smov [#allocation18]  }
 0x115   : > { %v2023_v12 = vpack.c.bf16 %v806_v10, %v805_v9  ;;  %v824_v15 = vld [vmem:[#allocation13 + $0x98] sm:$0xff]  ;;  %2022 = vmatprep.subr.bf16.mxu1 %v2021_v7  ;;  %v660_v18 = vld [vmem:[#allocation12 + $0x10] sm:$0xff]  ;;  %v678_v23 = vld [vmem:[#allocation12 + $0xa0] sm:$0xff]  ;;  %s2479_s17 = sshll.u32 %s2590_s15, 4  ;;  %s2480_s17 = int_to_ptr.vmem [resolvable:$false] %s2479_s17 }
 0x116   : > { %1992 = vmatpush3.bf16.msra.mxu0 %v1991_v8  ;;  %v2025_v17 = vpack.c.bf16 %v824_v15, %v823_v14  ;;  %v661_v19 = vld [vmem:[#allocation12 + $0x18] sm:$0xff]  ;;  %v807_v20 = vld [vmem:[#allocation13 + $0x10] sm:$0xff]  ;;  %v679_v24 = vld [vmem:[#allocation12 + $0xa8] sm:$0xff]  ;;  %p2482_p5 = scmp.lt.s32.totalorder %s3148_s27, %s2480_s17 }
 0x117   : > { %2024 = vmatpush3.bf16.msra.mxu1 %v2023_v12  ;;  %v1995_v21 = vpack.c.bf16 %v661_v19, %v660_v18  ;;  %v808_v22 = vld [vmem:[#allocation13 + $0x18] sm:$0xff]  ;;  %1994 = vmatprep.subr.bf16.mxu0 %v1993_v16  ;;  %v1997_v26 = vpack.c.bf16 %v679_v24, %v678_v23  ;;  %v825_v27 = vld [vmem:[#allocation13 + $0xa0] sm:$0xff]  ;;  %v826_v28 = vld [vmem:[#allocation13 + $0xa8] sm:$0xff]  ;;  %s3280_s22 = smov %s3279_s12 }
 0x118   : > { %2026 = vmatprep.subr.bf16.mxu1 %v2025_v17  ;;  %v2027_v25 = vpack.c.bf16 %v808_v22, %v807_v20  ;;  %v662_v29 = vld [vmem:[#allocation12 + $0x20] sm:$0xff]  ;;  %v2029_v30 = vpack.c.bf16 %v826_v28, %v825_v27  ;;  %v663_v31 = vld [vmem:[#allocation12 + $0x28] sm:$0xff]  ;;  %v680_v35 = vld [vmem:[#allocation12 + $0xb0] sm:$0xff]  ;;  %s1812_s30 = sshll.u32 %s3281_s9, 9 }
 0x119   : > { %v809_v32 = vld [vmem:[#allocation13 + $0x20] sm:$0xff]  ;;  %v810_v33 = vld [vmem:[#allocation13 + $0x28] sm:$0xff]  ;;  %v1999_v34 = vpack.c.bf16 %v663_v31, %v662_v29  ;;  %v681_v36 = vld [vmem:[#allocation12 + $0xb8] sm:$0xff] }
 0x11a   : > { %1996 = vmatpush3.bf16.msra.mxu0 %v1995_v21  ;;  %v827_v37 = vld [vmem:[#allocation13 + $0xb0] sm:$0xff]  ;;  %v2031_v38 = vpack.c.bf16 %v810_v33, %v809_v32  ;;  %v2001_v39 = vpack.c.bf16 %v681_v36, %v680_v35  ;;  %v828_v40 = vld [vmem:[#allocation13 + $0xb8] sm:$0xff]  ;;  %v682_v46 = vld [vmem:[#allocation12 + $0xc0] sm:$0xff] }
 0x11b   : > { %2028 = vmatpush3.bf16.msra.mxu1 %v2027_v25  ;;  %1998 = vmatprep.subr.bf16.mxu0 %v1997_v26  ;;  %v664_v41 = vld [vmem:[#allocation12 + $0x30] sm:$0xff]  ;;  %v665_v42 = vld [vmem:[#allocation12 + $0x38] sm:$0xff]  ;;  %v2033_v43 = vpack.c.bf16 %v828_v40, %v827_v37  ;;  %v683_v47 = vld [vmem:[#allocation12 + $0xc8] sm:$0xff] }
 0x11c   : > { %2030 = vmatprep.subr.bf16.mxu1 %v2029_v30  ;;  %v811_v44 = vld [vmem:[#allocation13 + $0x30] sm:$0xff]  ;;  %v812_v45 = vld [vmem:[#allocation13 + $0x38] sm:$0xff]  ;;  %v829_v48 = vld [vmem:[#allocation13 + $0xc0] sm:$0xff]  ;;  %v2003_v50 = vpack.c.bf16 %v665_v42, %v664_v41  ;;  %v2005_v52 = vpack.c.bf16 %v683_v47, %v682_v46 }
 0x11d   : > { %v830_v49 = vld [vmem:[#allocation13 + $0xc8] sm:$0xff]  ;;  %v2035_v51 = vpack.c.bf16 %v812_v45, %v811_v44  ;;  %v666_v53 = vld [vmem:[#allocation12 + $0x40] sm:$0xff]  ;;  %v684_v58 = vld [vmem:[#allocation12 + $0xd0] sm:$0xff] }
 0x11e   : > { %2000 = vmatpush3.bf16.msra.mxu0 %v1999_v34  ;;  %v667_v54 = vld [vmem:[#allocation12 + $0x48] sm:$0xff]  ;;  %v813_v55 = vld [vmem:[#allocation13 + $0x40] sm:$0xff]  ;;  %v2037_v56 = vpack.c.bf16 %v830_v49, %v829_v48  ;;  %v685_v59 = vld [vmem:[#allocation12 + $0xd8] sm:$0xff] }
 0x11f   : > { %2032 = vmatpush3.bf16.msra.mxu1 %v2031_v38  ;;  %2002 = vmatprep.subr.bf16.mxu0 %v2001_v39  ;;  %v814_v57 = vld [vmem:[#allocation13 + $0x48] sm:$0xff]  ;;  %v831_v60 = vld [vmem:[#allocation13 + $0xd0] sm:$0xff]  ;;  %v832_v61 = vld [vmem:[#allocation13 + $0xd8] sm:$0xff]  ;;  %v2007_v62 = vpack.c.bf16 %v667_v54, %v666_v53  ;;  %v2009_v0 = vpack.c.bf16 %v685_v59, %v684_v58 }
 0x120   : > { %2034 = vmatprep.subr.bf16.mxu1 %v2033_v43  ;;  %v2039_v63 = vpack.c.bf16 %v814_v57, %v813_v55  ;;  %v668_v1 = vld [vmem:[#allocation12 + $0x50] sm:$0xff]  ;;  %v669_v2 = vld [vmem:[#allocation12 + $0x58] sm:$0xff]  ;;  %v2041_v4 = vpack.c.bf16 %v832_v61, %v831_v60  ;;  %v686_v6 = vld [vmem:[#allocation12 + $0xe0] sm:$0xff] }
 0x121   : > { %v815_v3 = vld [vmem:[#allocation13 + $0x50] sm:$0xff]  ;;  %v816_v5 = vld [vmem:[#allocation13 + $0x58] sm:$0xff]  ;;  %v687_v7 = vld [vmem:[#allocation12 + $0xe8] sm:$0xff]  ;;  %v2011_v10 = vpack.c.bf16 %v669_v2, %v668_v1 }
 0x122   : > { %2004 = vmatpush3.bf16.msra.mxu0 %v2003_v50  ;;  %v833_v8 = vld [vmem:[#allocation13 + $0xe0] sm:$0xff]  ;;  %v834_v9 = vld [vmem:[#allocation13 + $0xe8] sm:$0xff]  ;;  %v2043_v12 = vpack.c.bf16 %v816_v5, %v815_v3  ;;  %v2013_v13 = vpack.c.bf16 %v687_v7, %v686_v6  ;;  %v688_v19 = vld [vmem:[#allocation12 + $0xf0] sm:$0xff] }
 0x123   : > { %2036 = vmatpush3.bf16.msra.mxu1 %v2035_v51  ;;  %2006 = vmatprep.subr.bf16.mxu0 %v2005_v52  ;;  %v670_v11 = vld [vmem:[#allocation12 + $0x60] sm:$0xff]  ;;  %v671_v14 = vld [vmem:[#allocation12 + $0x68] sm:$0xff]  ;;  %v2045_v17 = vpack.c.bf16 %v834_v9, %v833_v8  ;;  %v689_v20 = vld [vmem:[#allocation12 + $0xf8] sm:$0xff] }
 0x124   : > { %2038 = vmatprep.subr.bf16.mxu1 %v2037_v56  ;;  %v817_v15 = vld [vmem:[#allocation13 + $0x60] sm:$0xff]  ;;  %v3007_v16 = vld [vmem:[%s523_s1 + $0x8] sm:$0xff]  ;;  %v835_v21 = vld [vmem:[#allocation13 + $0xf0] sm:$0xff]  ;;  %v2015_v23 = vpack.c.bf16 %v671_v14, %v670_v11  ;;  %v2017_v25 = vpack.c.bf16 %v689_v20, %v688_v19 }
 0x125   : > { %v818_v18 = vld [vmem:[#allocation13 + $0x68] sm:$0xff]  ;;  %754 = vmatprep.mubr.f32.mxu0 %v3007_v16  ;;  %v836_v22 = vld [vmem:[#allocation13 + $0xf8] sm:$0xff]  ;;  %901 = vmatprep.mubr.f32.mxu1 %v3007_v16  ;;  %v672_v26 = vld [vmem:[#allocation12 + $0x70] sm:$0xff] }
 0x126   : > { %2008 = vmatpush3.bf16.msra.mxu0 %v2007_v62  ;;  %v2047_v24 = vpack.c.bf16 %v818_v18, %v817_v15  ;;  %v673_v27 = vld [vmem:[#allocation12 + $0x78] sm:$0xff]  ;;  %v819_v28 = vld [vmem:[#allocation13 + $0x70] sm:$0xff]  ;;  %v2049_v29 = vpack.c.bf16 %v836_v22, %v835_v21  ;;  %v953_v31 = vld [vmem:[#allocation15 + $0x80] sm:$0xff] }
 0x127   : > { %2040 = vmatpush3.bf16.msra.mxu1 %v2039_v63  ;;  %2010 = vmatprep.subr.bf16.mxu0 %v2009_v0  ;;  %v820_v30 = vld [vmem:[#allocation13 + $0x78] sm:$0xff]  ;;  %v954_v32 = vld [vmem:[#allocation15 + $0x88] sm:$0xff]  ;;  %v1082_v33 = vld [vmem:[#allocation16 + $0x80] sm:$0xff]  ;;  %v2019_v35 = vpack.c.bf16 %v673_v27, %v672_v26 }
 0x128   : > { %2042 = vmatprep.subr.bf16.mxu1 %v2041_v4  ;;  %v1083_v34 = vld [vmem:[#allocation16 + $0x88] sm:$0xff]  ;;  %v2051_v36 = vpack.c.bf16 %v820_v30, %v819_v28  ;;  %v2053_v37 = vpack.c.bf16 %v954_v32, %v953_v31  ;;  %v937_v38 = vld [vmem:[#allocation15] sm:$0xff]  ;;  %v955_v44 = vld [vmem:[#allocation15 + $0x90] sm:$0xff] }
 0x129   : > { %v938_v39 = vld [vmem:[#allocation15 + $0x8] sm:$0xff]  ;;  %v2085_v40 = vpack.c.bf16 %v1083_v34, %v1082_v33  ;;  %v1066_v41 = vld [vmem:[#allocation16] sm:$0xff]  ;;  %v956_v45 = vld [vmem:[#allocation15 + $0x98] sm:$0xff] }
 0x12a   : > { %2012 = vmatpush3.bf16.msra.mxu0 %v2011_v10  ;;  %v1067_v42 = vld [vmem:[#allocation16 + $0x8] sm:$0xff]  ;;  %v3013_v43 = vld [vmem:[%s523_s1] sm:$0xff]  ;;  %v2055_v46 = vpack.c.bf16 %v938_v39, %v937_v38  ;;  %v1085_v49 = vld [vmem:[#allocation16 + $0x98] sm:$0xff]  ;;  %v2057_v54 = vpack.c.bf16 %v956_v45, %v955_v44  ;;  %s3282_s1 = sld [smem:[#allocation31_spill]] }
 0x12b   : > { %2044 = vmatpush3.bf16.msra.mxu1 %v2043_v12  ;;  %2014 = vmatprep.subr.bf16.mxu0 %v2013_v13  ;;  %v3017_v47 = vld [vmem:[%s532_s8 + $0x8] sm:$0xff]  ;;  %v1084_v48 = vld [vmem:[#allocation16 + $0x90] sm:$0xff]  ;;  %v2087_v50 = vpack.c.bf16 %v1067_v42, %v1066_v41  ;;  %v957_v56 = vld [vmem:[#allocation15 + $0xa0] sm:$0xff] }
 0x12c   : > { %2046 = vmatprep.subr.bf16.mxu1 %v2045_v17  ;;  %v939_v51 = vld [vmem:[#allocation15 + $0x10] sm:$0xff]  ;;  %v940_v52 = vld [vmem:[#allocation15 + $0x18] sm:$0xff]  ;;  %v958_v57 = vld [vmem:[#allocation15 + $0xa8] sm:$0xff]  ;;  %v2089_v58 = vpack.c.bf16 %v1085_v49, %v1084_v48 }
 0x12d   : > { %v1068_v53 = vld [vmem:[#allocation16 + $0x10] sm:$0xff]  ;;  %v1069_v55 = vld [vmem:[#allocation16 + $0x18] sm:$0xff]  ;;  %v1086_v59 = vld [vmem:[#allocation16 + $0xa0] sm:$0xff]  ;;  %v2059_v62 = vpack.c.bf16 %v940_v52, %v939_v51  ;;  %v2061_v0 = vpack.c.bf16 %v958_v57, %v957_v56 }
 0x12e   : > { %2016 = vmatpush3.bf16.msra.mxu0 %v2015_v23  ;;  %v1087_v60 = vld [vmem:[#allocation16 + $0xa8] sm:$0xff]  ;;  %v3023_v61 = vld [vmem:[%s532_s8] sm:$0xff]  ;;  %v2091_v63 = vpack.c.bf16 %v1069_v55, %v1068_v53  ;;  %v960_v7 = vld [vmem:[#allocation15 + $0xb8] sm:$0xff]  ;;  %s3283_s8 = sld [smem:[#allocation37_spill]] }
 0x12f   : > { %2048 = vmatpush3.bf16.msra.mxu1 %v2047_v24  ;;  %2018 = vmatprep.subr.bf16.mxu0 %v2017_v25  ;;  %v941_v1 = vld [vmem:[#allocation15 + $0x20] sm:$0xff]  ;;  %v942_v2 = vld [vmem:[#allocation15 + $0x28] sm:$0xff]  ;;  %v2093_v4 = vpack.c.bf16 %v1087_v60, %v1086_v59  ;;  %v959_v6 = vld [vmem:[#allocation15 + $0xb0] sm:$0xff] }
 0x130   : > { %2050 = vmatprep.subr.bf16.mxu1 %v2049_v29  ;;  %v1070_v3 = vld [vmem:[#allocation16 + $0x20] sm:$0xff]  ;;  %v1071_v5 = vld [vmem:[#allocation16 + $0x28] sm:$0xff]  ;;  %v1088_v8 = vld [vmem:[#allocation16 + $0xb0] sm:$0xff]  ;;  %v2063_v11 = vpack.c.bf16 %v942_v2, %v941_v1  ;;  %v2065_v14 = vpack.c.bf16 %v960_v7, %v959_v6  ;;  %p3284_p0 = scmp.ne.s32.totalorder %s3282_s1, 0 }
 0x131   : > { %v1089_v9 = vld [vmem:[#allocation16 + $0xb8] sm:$0xff]  ;;  %v943_v12 = vld [vmem:[#allocation15 + $0x30] sm:$0xff]  ;;  %v2095_v13 = vpack.c.bf16 %v1071_v5, %v1070_v3  ;;  %v961_v21 = vld [vmem:[#allocation15 + $0xc0] sm:$0xff] }
 0x132   : > { %2020 = vmatpush3.bf16.msra.mxu0 %v2019_v35  ;;  %v3030_v10 = vld [vmem:[%s541_s21 + $0x8] sm:$0xff]  ;;  %v1072_v17 = vld [vmem:[#allocation16 + $0x30] sm:$0xff]  ;;  %v2097_v19 = vpack.c.bf16 %v1089_v9, %v1088_v8  ;;  %v1090_v23 = vld [vmem:[#allocation16 + $0xc0] sm:$0xff] }
 0x133   : > { %2052 = vmatpush3.bf16.msra.mxu1 %v2051_v36  ;;  %2054 = vmatprep.subr.bf16.mxu0 %v2053_v37  ;;  %v944_v15 = vld [vmem:[#allocation15 + $0x38] sm:$0xff]  ;;  %v3035_v18 = vld [vmem:[%s541_s21] sm:$0xff]  ;;  %v962_v22 = vld [vmem:[#allocation15 + $0xc8] sm:$0xff] }
 0x134   : > { %2086 = vmatprep.subr.bf16.mxu1 %v2085_v40  ;;  %v1073_v20 = vld [vmem:[#allocation16 + $0x38] sm:$0xff]  ;;  %v1091_v24 = vld [vmem:[#allocation16 + $0xc8] sm:$0xff]  ;;  %v2067_v25 = vpack.c.bf16 %v944_v15, %v943_v12  ;;  %v945_v26 = vld [vmem:[#allocation15 + $0x40] sm:$0xff]  ;;  %v2069_v29 = vpack.c.bf16 %v962_v22, %v961_v21  ;;  %s3146_s21 = scalar_lea.hbm %s3283_s8, %s1812_s30 }
 0x135   : > { %755 = vmatmul.mubr.f32.vlgmr.msra.gmra.mrb[0].mxu0 %v3013_v43  ;;  %v3042_v27 = vld [vmem:[%s550_s16 + $0x8] sm:$0xff]  ;;  %v2099_v28 = vpack.c.bf16 %v1073_v20, %v1072_v17  ;;  %v1074_v31 = vld [vmem:[#allocation16 + $0x40] sm:$0xff]  ;;  %v2101_v33 = vpack.c.bf16 %v1091_v24, %v1090_v23  ;;  %v963_v35 = vld [vmem:[#allocation15 + $0xd0] sm:$0xff] }
 0x136   : > { %902 = vmatmul.mubr.f32.vlgmr.msra.gmra.mrb[0].mxu1 %v3013_v43  ;;  %2056 = vmatpush3.bf16.msra.mxu0 %v2055_v46  ;;  %v946_v30 = vld [vmem:[#allocation15 + $0x48] sm:$0xff]  ;;  %v3046_v32 = vld [vmem:[%s550_s16] sm:$0xff]  ;;  %v964_v36 = vld [vmem:[#allocation15 + $0xd8] sm:$0xff]  ;;  %s2475_s16 = scalar_lea.vmem %s3148_s27, 512 }
 0x137   : > { %2088 = vmatpush3.bf16.msra.mxu1 %v2087_v50  ;;  %759 = vmatprep.mubr.f32.mxu0 %v3017_v47  ;;  %v1075_v34 = vld [vmem:[#allocation16 + $0x48] sm:$0xff]  ;;  %v1092_v37 = vld [vmem:[#allocation16 + $0xd0] sm:$0xff]  ;;  %v1093_v38 = vld [vmem:[#allocation16 + $0xd8] sm:$0xff]  ;;  %v2071_v39 = vpack.c.bf16 %v946_v30, %v945_v26  ;;  %v2073_v41 = vpack.c.bf16 %v964_v36, %v963_v35  ;;  %p2476_p12 = scmp.ne.s32.totalorder %s3148_s27, %s2475_s16 }
 0x138   : > { %906 = vmatprep.mubr.f32.mxu1 %v3017_v47  ;;  %2058 = vmatprep.subr.bf16.mxu0 %v2057_v54  ;;  %v2103_v40 = vpack.c.bf16 %v1075_v34, %v1074_v31  ;;  %v947_v42 = vld [vmem:[#allocation15 + $0x50] sm:$0xff]  ;;  %v948_v44 = vld [vmem:[#allocation15 + $0x58] sm:$0xff]  ;;  %v2105_v46 = vpack.c.bf16 %v1093_v38, %v1092_v37  ;;  %v965_v49 = vld [vmem:[#allocation15 + $0xe0] sm:$0xff] }
 0x139   : > { %760 = vmatmul.mubr.f32.gmra.mrb[2].mxu0 %v3023_v61  ;;  %2090 = vmatprep.subr.bf16.mxu1 %v2089_v58  ;;  %v1076_v45 = vld [vmem:[#allocation16 + $0x50] sm:$0xff]  ;;  %v1077_v48 = vld [vmem:[#allocation16 + $0x58] sm:$0xff]  ;;  %v966_v50 = vld [vmem:[#allocation15 + $0xe8] sm:$0xff]  ;;  %v2075_v53 = vpack.c.bf16 %v948_v44, %v947_v42  ;;  %v1212_v42 = vlaneseq  ;;  %p2477_p11 = pnand %p2476_p12, %p3284_p0 }
 0x13a   : > { %907 = vmatmul.mubr.f32.gmra.mrb[2].mxu1 %v3023_v61  ;;  %2060 = vmatpush3.bf16.msra.mxu0 %v2059_v62  ;;  %v1094_v51 = vld [vmem:[#allocation16 + $0xe0] sm:$0xff]  ;;  %v1095_v52 = vld [vmem:[#allocation16 + $0xe8] sm:$0xff]  ;;  %v2107_v54 = vpack.c.bf16 %v1077_v48, %v1076_v45  ;;  %v2077_v55 = vpack.c.bf16 %v966_v50, %v965_v49  ;;  %v967_v62 = vld [vmem:[#allocation15 + $0xf0] sm:$0xff] }
 0x13b   : > { %2092 = vmatpush3.bf16.msra.mxu1 %v2091_v63  ;;  %2062 = vmatprep.subr.bf16.mxu0 %v2061_v0  ;;  %v949_v56 = vld [vmem:[#allocation15 + $0x60] sm:$0xff]  ;;  %v950_v57 = vld [vmem:[#allocation15 + $0x68] sm:$0xff]  ;;  %v2109_v59 = vpack.c.bf16 %v1095_v52, %v1094_v51  ;;  %v968_v63 = vld [vmem:[#allocation15 + $0xf8] sm:$0xff]  ;;  %p2478_p3 = pneg %p2477_p11 }
 0x13c   : > { %2094 = vmatprep.subr.bf16.mxu1 %v2093_v4  ;;  %911 = vmatprep.mubr.f32.mxu1 %v3030_v10  ;;  %v1078_v58 = vld [vmem:[#allocation16 + $0x60] sm:$0xff]  ;;  %v1079_v60 = vld [vmem:[#allocation16 + $0x68] sm:$0xff]  ;;  %v1096_v0 = vld [vmem:[#allocation16 + $0xf0] sm:$0xff]  ;;  %v2079_v2 = vpack.c.bf16 %v950_v57, %v949_v56  ;;  %v2081_v3 = vpack.c.bf16 %v968_v63, %v967_v62 }
 0x13d   : > { %764 = vmatprep.mubr.f32.mxu0 %v3030_v10  ;;  %v1097_v1 = vld [vmem:[#allocation16 + $0xf8] sm:$0xff]  ;;  %v951_v4 = vld [vmem:[#allocation15 + $0x70] sm:$0xff]  ;;  %v1798_v62 = vld [vmem:[%s3280_s22 + $0x3] ss:$0 sm:$0xff] }
 0x13e   : > { %2064 = vmatpush3.bf16.msra.mxu0 %v2063_v11  ;;  %912 = vmatmul.mubr.f32.gmra.mrb[4].mxu1 %v3035_v18  ;;  %v952_v5 = vld [vmem:[#allocation15 + $0x78] sm:$0xff]  ;;  %v2113_v6 = vpack.c.bf16 %v1097_v1, %v1096_v0  ;;  %v1080_v7 = vld [vmem:[#allocation16 + $0x70] sm:$0xff] }
 0x13f   : > { %2096 = vmatpush3.bf16.msra.mxu1 %v2095_v13  ;;  %2066 = vmatprep.subr.bf16.mxu0 %v2065_v14  ;;  %v1081_v8 = vld [vmem:[#allocation16 + $0x78] sm:$0xff]  ;;  %v2083_v9 = vpack.c.bf16 %v952_v5, %v951_v4 }
 0x140   : > { %2098 = vmatprep.subr.bf16.mxu1 %v2097_v19  ;;  %765 = vmatmul.mubr.f32.gmra.mrb[4].mxu0 %v3035_v18  ;;  %v2115_v11 = vpack.c.bf16 %v1081_v8, %v1080_v7 }
 0x141   : > { %916 = vmatprep.mubr.f32.mxu1 %v3042_v27  ;;  %769 = vmatprep.mubr.f32.mxu0 %v3042_v27 }
 0x142   : > { %2068 = vmatpush3.bf16.msra.mxu0 %v2067_v25  ;;  %917 = vmatmul.mubr.f32.gmra.mrb[6].mxu1 %v3046_v32 }
 0x143   : > { %2100 = vmatpush3.bf16.msra.mxu1 %v2099_v28  ;;  %2070 = vmatprep.subr.bf16.mxu0 %v2069_v29 }
 0x144   : > { %2102 = vmatprep.subr.bf16.mxu1 %v2101_v33  ;;  %770 = vmatmul.mubr.f32.gmra.mrb[6].mxu0 %v3046_v32 }
 0x145   : > { %1033 = vmatprep.mubr.f32.mxu0 %v3007_v16  ;;  %1162 = vmatprep.mubr.f32.mxu1 %v3007_v16  ;;  %v2111_v16 = vpack.c.bf16 %v1079_v60, %v1078_v58  ;;  %v1792_v58 = vld [vmem:[%s3279_s12 + $0x2] ss:$0 sm:$0xff]  ;;  %s2481_s12 = scalar_lea.vmem %s2480_s17, 1024 }
 0x146   : > { %2072 = vmatpush3.bf16.msra.mxu0 %v2071_v39  ;;  %p2483_p10 = scmp.lt.s32.totalorder %s2481_s12, %s2475_s16 }
 0x147   : > { %2104 = vmatpush3.bf16.msra.mxu1 %v2103_v40  ;;  %2074 = vmatprep.subr.bf16.mxu0 %v2073_v41  ;;  %v2589_v40 = vmov 1966171168  }
 0x148   : > { %2106 = vmatprep.subr.bf16.mxu1 %v2105_v46  ;;  %v1210_v41 = vunpack.c.l.s4 %v2589_v40  ;;  %p2484_p2 = por %p2483_p10, %p2482_p5 }
 0x14a   : > { %2076 = vmatpush3.bf16.msra.mxu0 %v2075_v53  ;;  %v1211_v52 = vunpack.c.0.s8 %v1210_v41  ;;  %v1213_v53 = vshrl.u32 %v1212_v42, 7  ;;  %p2485_p8 = pnand %p2484_p2, %p2478_p3 }
 0x14b   : > { %2108 = vmatpush3.bf16.msra.mxu1 %v2107_v54  ;;  %2078 = vmatprep.subr.bf16.mxu0 %v2077_v55 }
 0x14c   : > { %2110 = vmatprep.subr.bf16.mxu1 %v2109_v59  ;;  %v3075_v60 = vsub.s32 %v1211_v52, %v1213_v53 }
 0x14e   : > { %2080 = vmatpush3.bf16.msra.mxu0 %v2079_v2 }
 0x14f   : > { %2112 = vmatpush3.bf16.msra.mxu1 %v2111_v16  ;;  %2082 = vmatprep.subr.bf16.mxu0 %v2081_v3 }
 0x150   : > { %2114 = vmatprep.subr.bf16.mxu1 %v2113_v6 }
 0x152   : > { %2084 = vmatpush3.bf16.msra.mxu0 %v2083_v9 }
 0x153   : > { %2116 = vmatpush3.bf16.msra.mxu1 %v2115_v11 }
 0x155   : > { %1034 = vmatmul.mubr.f32.vlgmr.msra.gmra.mrb[8].mxu0 %v3013_v43 }
 0x156   : > { %1163 = vmatmul.mubr.f32.vlgmr.msra.gmra.mrb[8].mxu1 %v3013_v43  ;;  %1038 = vmatprep.mubr.f32.mxu0 %v3017_v47 }
 0x157   : > { %1167 = vmatprep.mubr.f32.mxu1 %v3017_v47 }
 0x159   : > { %1039 = vmatmul.mubr.f32.gmra.mrb[10].mxu0 %v3023_v61 }
 0x15a   : > { %1168 = vmatmul.mubr.f32.gmra.mrb[10].mxu1 %v3023_v61  ;;  %1043 = vmatprep.mubr.f32.mxu0 %v3030_v10 }
 0x15b   : > { %1172 = vmatprep.mubr.f32.mxu1 %v3030_v10 }
 0x15d   : > { %1044 = vmatmul.mubr.f32.gmra.mrb[12].mxu0 %v3035_v18 }
 0x15e   : > { %1173 = vmatmul.mubr.f32.gmra.mrb[12].mxu1 %v3035_v18  ;;  %1048 = vmatprep.mubr.f32.mxu0 %v3042_v27 }
 0x15f   : > { %1177 = vmatprep.mubr.f32.mxu1 %v3042_v27 }
 0x161   : > { %1049 = vmatmul.mubr.f32.gmra.mrb[14].mxu0 %v3046_v32 }
 0x162   : > { %1178 = vmatmul.mubr.f32.gmra.mrb[14].mxu1 %v3046_v32 }
 0x208   : > { %v1845_v43 = vpop.f32.mrb[0].mxu0 }
 0x209   : > { %v1846_v47 = vpop.f32.mrb[1].mxu0  ;;  %v1889_v12 = vpop.f32.mrb[0].mxu1 }
 0x20a   : > { %v1847_v61 = vadd.f32 %v1846_v47, %v1845_v43  ;;  %v1890_v13 = vpop.f32.mrb[1].mxu1 }
 0x20b   : > { %v1891_v14 = vadd.f32 %v1890_v13, %v1889_v12 }
 0x20c   : > { %v1848_v15 = vpop.f32.mrb[2].mxu0 }
 0x20d   : > { %v1892_v10 = vpop.f32.mrb[2].mxu1  ;;  %v1849_v17 = vpop.f32.mrb[3].mxu0 }
 0x20e   : > { %v1850_v19 = vadd.f32 %v1849_v17, %v1848_v15  ;;  %v1893_v20 = vpop.f32.mrb[3].mxu1 }
 0x20f   : > { %v1894_v18 = vadd.f32 %v1893_v20, %v1892_v10 }
 0x210   : > { %v3069_v21 = vadd.f32 %v1891_v14, %v1850_v19 }
 0x211   : > { %v927_v22 = vsub.f32 %v1847_v61, %v1894_v18  ;;  %v1895_v23 = vpop.f32.mrb[4].mxu1 }
 0x212   : > { %v1896_v24 = vpop.f32.mrb[5].mxu1 }
 0x213   : > { %v1897_v25 = vadd.f32 %v1896_v24, %v1895_v23  ;;  %v1851_v26 = vpop.f32.mrb[4].mxu0 }
 0x214   : > { %v1852_v27 = vpop.f32.mrb[5].mxu0 }
 0x215   : > { %v1898_v28 = vpop.f32.mrb[6].mxu1  ;;  %v1853_v29 = vadd.f32 %v1852_v27, %v1851_v26 }
 0x216   : > { %v1899_v30 = vpop.f32.mrb[7].mxu1 }
 0x217   : > { %v1900_v31 = vadd.f32 %v1899_v30, %v1898_v28  ;;  %v1854_v32 = vpop.f32.mrb[6].mxu0 }
 0x218   : > { %v1855_v33 = vpop.f32.mrb[7].mxu0 }
 0x219   : > { %v935_v34 = vsub.f32 %v1853_v29, %v1900_v31  ;;  %v1856_v35 = vadd.f32 %v1855_v33, %v1854_v32 }
 0x21b   : > { %v931_v36 = vadd.f32 %v1897_v25, %v1856_v35 }
 0x228   : > { %v1933_v37 = vpop.f32.mrb[8].mxu0 }
 0x229   : > { %v1934_v38 = vpop.f32.mrb[9].mxu0  ;;  %v1977_v39 = vpop.f32.mrb[8].mxu1 }
 0x22a   : > { %v1935_v44 = vadd.f32 %v1934_v38, %v1933_v37  ;;  %v1978_v45 = vpop.f32.mrb[9].mxu1 }
 0x22b   : > { %v1979_v46 = vadd.f32 %v1978_v45, %v1977_v39 }
 0x22c   : > { %v1055_v48 = vadd.f32 %v1935_v44, %v935_v34  ;;  %v1936_v49 = vpop.f32.mrb[10].mxu0 }
 0x22d   : > { %v1980_v50 = vpop.f32.mrb[10].mxu1  ;;  %v1937_v51 = vpop.f32.mrb[11].mxu0 }
 0x22e   : > { %v1938_v54 = vadd.f32 %v1937_v51, %v1936_v49  ;;  %v1981_v55 = vpop.f32.mrb[11].mxu1 }
 0x22f   : > { %v1982_v56 = vadd.f32 %v1981_v55, %v1980_v50 }
 0x230   : > { %v1058_v57 = vsub.f32 %v931_v36, %v1938_v54  ;;  %v1939_v59 = vpop.f32.mrb[12].mxu0  ;;  %v1780_v36 = vld [vmem:[%s3280_s22] ss:$0 sm:$0xff] }
 0x231   : > { %v1187_v63 = vadd.f32 %v1982_v56, %v1055_v48  ;;  %v1940_v0 = vpop.f32.mrb[13].mxu0  ;;  %v1983_v1 = vpop.f32.mrb[12].mxu1 }
 0x232   : > { %v1184_v2 = vadd.f32 %v1979_v46, %v1058_v57  ;;  %v1941_v16 = vadd.f32 %v1940_v0, %v1939_v59  ;;  %v1984_v3 = vpop.f32.mrb[13].mxu1 }
 0x233   : > { %v1358_v4 = vadd.f32 %v1792_v58, %v1187_v63  ;;  %v1985_v5 = vadd.f32 %v1984_v3, %v1983_v1 }
 0x234   : > { %v1434_v6 = vadd.f32 %v1798_v62, %v1184_v2  ;;  %v1061_v7 = vsub.f32 %v927_v22, %v1941_v16  ;;  %v1942_v8 = vpop.f32.mrb[14].mxu0 }
 0x235   : > { %v1360_v9 = vcombine.high %v1358_v4, %v1358_v4  ;;  %v1367_v11 = vrot.slane %v1358_v4, %v3075_v60  ;;  %v1986_v43 = vpop.f32.mrb[14].mxu1  ;;  %v1943_v47 = vpop.f32.mrb[15].mxu0 }
 0x236   : > { %v1436_v12 = vcombine.high %v1434_v6, %v1434_v6  ;;  %v1443_v61 = vrot.slane %v1434_v6, %v3075_v60  ;;  %v1944_v13 = vadd.f32 %v1943_v47, %v1942_v8  ;;  %v1987_v14 = vpop.f32.mrb[15].mxu1 }
 0x237   : > { %v1374_v15 = vrot.slane %v1360_v9, %v3075_v60  ;;  %v1375_v10 = vcombine.high %v1367_v11, %v1367_v11  ;;  %v1383_v17 = vrot.slane %v1367_v11, %v3075_v60  ;;  %1793 = vst.sshfl [vmem:[%s3084_s23 + $0x2] sm:$0x1 pattern:$0x73625140] %v1367_v11  ;;  %v1988_v19 = vadd.f32 %v1987_v14, %v1986_v43 }
 0x238   : > { %v1450_v20 = vrot.slane %v1436_v12, %v3075_v60  ;;  %v1451_v18 = vcombine.high %v1443_v61, %v1443_v61  ;;  %v1459_v22 = vrot.slane %v1443_v61, %v3075_v60  ;;  %1799 = vst.sshfl [vmem:[%s3084_s23 + $0x3] sm:$0x1 pattern:$0x73625140] %v1443_v61  ;;  %v1064_v23 = vadd.f32 %v1944_v13, %v3069_v21  ;;  %v1786_v21 = vld [vmem:[%s3280_s22 + $0x1] ss:$0 sm:$0xff] }
 0x239   : > { %v1376_v24 = vcombine.high %v1374_v15, %v1374_v15  ;;  %v1390_v25 = vrot.slane %v1374_v15, %v3075_v60  ;;  %v1397_v26 = vrot.slane %v1375_v10, %v3075_v60  ;;  %v1405_v27 = vcombine.high %v1383_v17, %v1383_v17  ;;  %1794 = vst.sshfl [vmem:[%s3084_s23 + $0x6] sm:$0x1 pattern:$0x73625140] %v1375_v10 }
 0x23a   : > { %1795 = vst.sshfl [vmem:[%s3084_s23 + $0x12] sm:$0x1 pattern:$0x73625140] %v1374_v15  ;;  %v1452_v28 = vcombine.high %v1450_v20, %v1450_v20  ;;  %v1466_v29 = vrot.slane %v1450_v20, %v3075_v60  ;;  %v1473_v30 = vrot.slane %v1451_v18, %v3075_v60  ;;  %v1481_v31 = vcombine.high %v1459_v22, %v1459_v22 }
 0x23b   : > { %1800 = vst.sshfl [vmem:[%s3084_s23 + $0x7] sm:$0x1 pattern:$0x73625140] %v1451_v18  ;;  %v1404_v32 = vrot.slane %v1376_v24, %v3075_v60  ;;  %v1406_v33 = vcombine.high %v1390_v25, %v1390_v25  ;;  %v1407_v34 = vcombine.high %v1397_v26, %v1397_v26  ;;  %1419 = vst [vmem:[%s3084_s23 + $0xa] sm:$0x1] %v1405_v27 }
 0x23c   : > { %1801 = vst.sshfl [vmem:[%s3084_s23 + $0x13] sm:$0x1 pattern:$0x73625140] %v1450_v20  ;;  %v1190_v35 = vsub.f32 %v1064_v23, %v1985_v5  ;;  %v1480_v37 = vrot.slane %v1452_v28, %v3075_v60  ;;  %v1482_v38 = vcombine.high %v1466_v29, %v1466_v29  ;;  %v1483_v39 = vcombine.high %v1473_v30, %v1473_v30 }
 0x23d   : > { %1796 = vst.sshfl [vmem:[%s3084_s23 + $0x16] sm:$0x1 pattern:$0x73625140] %v1376_v24  ;;  %1495 = vst [vmem:[%s3084_s23 + $0xb] sm:$0x1] %v1481_v31  ;;  %v1193_v40 = vsub.f32 %v1061_v7, %v1988_v19  ;;  %v1408_v41 = vcombine.high %v1404_v32, %v1404_v32 }
 0x23e   : > { %1802 = vst.sshfl [vmem:[%s3084_s23 + $0x17] sm:$0x1 pattern:$0x73625140] %v1452_v28  ;;  %1420 = vst [vmem:[%s3084_s23 + $0xe] sm:$0x1] %v1407_v34  ;;  %v1282_v42 = vadd.f32 %v1786_v21, %v1190_v35  ;;  %v1484_v44 = vcombine.high %v1480_v37, %v1480_v37 }
 0x23f   : > { %1423 = vst [vmem:[%s3084_s23 + $0x1a] sm:$0x1] %v1406_v33  ;;  %1496 = vst [vmem:[%s3084_s23 + $0xf] sm:$0x1] %v1483_v39  ;;  %v1206_v45 = vadd.f32 %v1780_v36, %v1193_v40 }
 0x240   : > { %1499 = vst [vmem:[%s3084_s23 + $0x1b] sm:$0x1] %v1482_v38  ;;  %1424 = vst [vmem:[%s3084_s23 + $0x1e] sm:$0x1] %v1408_v41  ;;  %v1284_v46 = vcombine.high %v1282_v42, %v1282_v42  ;;  %v1291_v48 = vrot.slane %v1282_v42, %v3075_v60 }
 0x241   : > { %1500 = vst [vmem:[%s3084_s23 + $0x1f] sm:$0x1] %v1484_v44  ;;  %v1208_v49 = vcombine.high %v1206_v45, %v1206_v45  ;;  %v1215_v50 = vrot.slane %v1206_v45, %v3075_v60 }
 0x242   : > { %v1298_v51 = vrot.slane %v1284_v46, %v3075_v60  ;;  %v1299_v52 = vcombine.high %v1291_v48, %v1291_v48  ;;  %v1307_v53 = vrot.slane %v1291_v48, %v3075_v60  ;;  %1787 = vst.sshfl [vmem:[%s3084_s23 + $0x1] sm:$0x1 pattern:$0x73625140] %v1291_v48 }
 0x243   : > { %v1222_v54 = vrot.slane %v1208_v49, %v3075_v60  ;;  %v1223_v55 = vcombine.high %v1215_v50, %v1215_v50  ;;  %v1231_v56 = vrot.slane %v1215_v50, %v3075_v60  ;;  %1781 = vst.sshfl [vmem:[%s3084_s23] sm:$0x1 pattern:$0x73625140] %v1215_v50 }
 0x244   : > { %v1300_v57 = vcombine.high %v1298_v51, %v1298_v51  ;;  %v1314_v58 = vrot.slane %v1298_v51, %v3075_v60  ;;  %v1321_v59 = vrot.slane %v1299_v52, %v3075_v60  ;;  %v1329_v62 = vcombine.high %v1307_v53, %v1307_v53  ;;  %1788 = vst.sshfl [vmem:[%s3084_s23 + $0x5] sm:$0x1 pattern:$0x73625140] %v1299_v52 }
 0x245   : > { %1789 = vst.sshfl [vmem:[%s3084_s23 + $0x11] sm:$0x1 pattern:$0x73625140] %v1298_v51  ;;  %v1224_v63 = vcombine.high %v1222_v54, %v1222_v54  ;;  %v1238_v0 = vrot.slane %v1222_v54, %v3075_v60  ;;  %v1245_v1 = vrot.slane %v1223_v55, %v3075_v60  ;;  %v1253_v2 = vcombine.high %v1231_v56, %v1231_v56 }
 0x246   : > { %1782 = vst.sshfl [vmem:[%s3084_s23 + $0x4] sm:$0x1 pattern:$0x73625140] %v1223_v55  ;;  %v1328_v16 = vrot.slane %v1300_v57, %v3075_v60  ;;  %v1330_v3 = vcombine.high %v1314_v58, %v1314_v58  ;;  %v1331_v4 = vcombine.high %v1321_v59, %v1321_v59  ;;  %1343 = vst [vmem:[%s3084_s23 + $0x9] sm:$0x1] %v1329_v62 }
 0x247   : > { %1783 = vst.sshfl [vmem:[%s3084_s23 + $0x10] sm:$0x1 pattern:$0x73625140] %v1222_v54  ;;  %v1252_v5 = vrot.slane %v1224_v63, %v3075_v60  ;;  %v1254_v6 = vcombine.high %v1238_v0, %v1238_v0  ;;  %v1255_v7 = vcombine.high %v1245_v1, %v1245_v1  ;;  %1267 = vst [vmem:[%s3084_s23 + $0x8] sm:$0x1] %v1253_v2 }
 0x248   : > { %1790 = vst.sshfl [vmem:[%s3084_s23 + $0x15] sm:$0x1 pattern:$0x73625140] %v1300_v57  ;;  %v1332_v8 = vcombine.high %v1328_v16, %v1328_v16  ;;  %1344 = vst [vmem:[%s3084_s23 + $0xd] sm:$0x1] %v1331_v4 }
 0x249   : > { %1784 = vst.sshfl [vmem:[%s3084_s23 + $0x14] sm:$0x1 pattern:$0x73625140] %v1224_v63  ;;  %1347 = vst [vmem:[%s3084_s23 + $0x19] sm:$0x1] %v1330_v3  ;;  %v1256_v9 = vcombine.high %v1252_v5, %v1252_v5 }
 0x24a   : > { %1268 = vst [vmem:[%s3084_s23 + $0xc] sm:$0x1] %v1255_v7  ;;  %1271 = vst [vmem:[%s3084_s23 + $0x18] sm:$0x1] %v1254_v6 }
 0x24b   : > { %1348 = vst [vmem:[%s3084_s23 + $0x1d] sm:$0x1] %v1332_v8  ;;  %1272 = vst [vmem:[%s3084_s23 + $0x1c] sm:$0x1] %v1256_v9 }
 0x24c   : > { %2488 = shalt.err (!%p2485_p8)
}
 0x24d   : > { %s2489_s5 = scalar_lea.hbm %s3146_s21, 512  ;;  %s2493_s23 = scalar_lea.hbm %s3283_s8, 1024 }
 0x24e   : > { %p2490_p9 = scmp.ne.s32.totalorder %s3146_s21, %s2489_s5  ;;  %p2494_p4 = scmp.lt.u32.totalorder %s3146_s21, %s3283_s8 }
 0x24f   : > { %p2495_p1 = scmp.lt.u32.totalorder %s2493_s23, %s2489_s5  ;;  %p2497_p12 = scmp.lt.u32.totalorder %s2489_s5, %s3146_s21 }
 0x250   : > { %p2491_p7 = pnand %p2490_p9, %p3284_p0 }
 0x251   : > { %p2496_p13 = por %p2495_p1, %p2494_p4 }
 0x252   : > { %p2492_p6 = pneg %p2491_p7 }
 0x253   : > { %p2498_p11 = por %p2497_p12, %p2496_p13 }
 0x255   : > { %p2499_p3 = pnand %p2498_p11, %p2492_p6 }
 0x257   : > { %2502 = shalt.err (!%p2499_p3)
}
 0x258   : > { %s2591_s26 = smov 64   ;;  %s2592_s13 = smov 4  }
 0x259   : > { %2141 = dma.vmem_to_hbm [thread:$0]  (%p3284_p0), %s3148_s27, 512, %s3146_s21, %s1502_s28, %s2591_s26, %s2591_s26, %s2592_s13  }
 0x25a PF: > { %s3285_s9 = sld [smem:[#allocation26_spill]]  ;;  %s3286_s30 = sld [smem:[#allocation29_spill]] }
 0x25b   : > { %p3288_p10 = scmp.ge.s32.totalorder %s2577_s14, 2 }
 0x260   : > { %s1531_s19 = sand.u32 1, %s3285_s9   ;;  %p3287_p5 = scmp.ne.s32.totalorder %s3286_s30, 0 }
 0x261   : > { %s1532_s25 = scalar_lea.sflag [#allocation6], %s1531_s19 }
 0x262   : > { %p2170_p2 = pnand %p3288_p10, %p3287_p5 }
 0x264   : > { %2552 = dma.done.wait (!%p2170_p2), %s1532_s25, 512  }
 0x265   : > { %2554 = vsyncadd (!%p2170_p2), %s1532_s25, 4294966784  ;;  %s33_s14 = sadd.s32 1, %s2577_s14   ;;  %s3289_s16 = sld [smem:[#allocation32_spill]] }
 0x266   : > { %p30_p8 = scmp.ge.s32.totalorder %s33_s14, 4   ;;  %s3290_s12 = sld [smem:[#allocation28_spill]] }
 0x267   : > { %s3291_s13 = sld [smem:[#allocation30_spill]]  ;;  %s3292_s30 = smov %s2561_s10 }
 0x268   : > { %s3293_s10 = smov %s2565_s11  ;;  %32 = sbr.rel (!%p30_p8) target bundleno = 18 (0x12), region = 185 }
 0x26b   : > { %s3294_s11 = smov %s3289_s16 }
 0x26f   :  { %1537 = vsyncpa [#allocation5], 1 }
 0x270   :  { %1539 = vsyncpa [#allocation5 + $0x1], 1 }
 0x271   :  { %1540 = vsyncpa [#allocation8], 1 }
 0x272   :  { %1542 = vsyncpa [#allocation8 + $0x1], 1 }
 0x273   :  { %1543 = vsyncpa [#allocation11], 1 }
 0x274   :  { %1545 = vsyncpa [#allocation11 + $0x1], 1 }
 0x275   :  { %1546 = vsyncpa [#allocation14], 1 }
 0x276   :  { %1547 = vsyncpa [#allocation17], 1 }
 0x277   :  { %1548 = vsyncpa [#allocation6], 1 }
 0x278   :  { %1550 = vsyncpa [#allocation6 + $0x1], 1 }

</bundles_post_ra>
